<compile_context>
chip_gen: v6e
topology: v6e:2x2x1
jax: 0.10.0
libtpu: 0.0.40
codegen_flags: <defaults>
</compile_context>

<pallas_src>
import functools
from typing import NamedTuple

import jax
import jax.numpy as jnp
from jax.experimental import pallas as pl
from jax.experimental.pallas import tpu as pltpu

EPS = 1e-5                    # torch.nn.LayerNorm default eps
_UNROLL_MAX_LAYERS = 16       # static unroll threshold for the resident path


def _round_up(x, m):
    return (x + m - 1) // m * m


def _layernorm(h, gamma, beta, inv_n, n_pad):
    """LayerNorm over the last axis with centered variance.

    `inv_n` is 1/true_feature_count; `n_pad` is the number of zero-padded lanes.
    Padded lanes contribute exactly mean^2 each to sum((h-mean)^2); that is
    subtracted back out, so statistics match the unpadded computation. gamma/beta
    padding is zero, so padded lanes stay exactly 0 in the output.
    """
    mean = jnp.sum(h, axis=-1, keepdims=True) * inv_n
    d = h - mean
    var = jnp.sum(d * d, axis=-1, keepdims=True) * inv_n
    if n_pad:
        var = var - (n_pad * inv_n) * (mean * mean)
    var = jnp.maximum(var, 0.0)
    return d * jax.lax.rsqrt(var + EPS) * gamma + beta


# --------------------------------------------------------------------------- #
# Kernels
# --------------------------------------------------------------------------- #
def resnorm_resident_kernel(x_ref,
                            w_in_ref, b_in_ref, g_in_ref, bt_in_ref,
                            w_hid_ref, b_hid_ref, g_hid_ref, bt_hid_ref,
                            w_out_ref, b_out_ref,
                            o_ref, *, true_hidden, n_pad):
    """All weights VMEM-resident; 1-D batch grid."""
    inv_h = jnp.float32(1.0 / true_hidden)
    num_layers = w_hid_ref.shape[0]
    cdt = w_hid_ref.dtype

    # input layer: Linear -> LayerNorm -> ReLU (bf16 matmul, f32 accumulate)
    h = jnp.dot(x_ref[...], w_in_ref[...],
                preferred_element_type=jnp.float32) + b_in_ref[...]
    h = _layernorm(h, g_in_ref[...], bt_in_ref[...], inv_h, n_pad)
    h = jnp.maximum(h, 0.0)

    def block(i, h, add_residual):
        residual = h
        z = jnp.dot(h.astype(cdt), w_hid_ref[i],
                    preferred_element_type=jnp.float32) + b_hid_ref[pl.ds(i, 1), :]
        z = _layernorm(z, g_hid_ref[pl.ds(i, 1), :], bt_hid_ref[pl.ds(i, 1), :],
                       inv_h, n_pad)
        z = jnp.maximum(z, 0.0)
        return z + residual if add_residual else z

    if num_layers <= _UNROLL_MAX_LAYERS:
        # static unroll: full cross-layer visibility for the LLO scheduler
        for i in range(num_layers):
            h = block(i, h, i % 2 == 1)
    else:
        # deeper nets: fori_loop over layer *pairs* (static residual parity),
        # unrolled x2 so consecutive layers' MXU/VPU work can interleave.
        def pair_body(p, h):
            i0 = 2 * p
            h = block(i0, h, False)
            h = block(i0 + 1, h, True)
            return h

        h = jax.lax.fori_loop(0, num_layers // 2, pair_body, h, unroll=2)
        if num_layers % 2 == 1:
            h = block(num_layers - 1, h, False)

    out = jnp.dot(h.astype(cdt), w_out_ref[...],
                  preferred_element_type=jnp.float32) + b_out_ref[...]
    o_ref[...] = jnp.tanh(out)


def resnorm_stream_kernel(x_ref,
                          w_in_ref, b_in_ref, g_in_ref, bt_in_ref,
                          w_hid_ref, b_hid_ref, g_hid_ref, bt_hid_ref,
                          w_out_ref, b_out_ref,
                          o_ref, h_ref, *, true_hidden, n_pad):
    """w_hid streamed one layer per 'arbitrary' grid step; h carried in VMEM scratch."""
    l = pl.program_id(1)
    inv_h = jnp.float32(1.0 / true_hidden)
    cdt = w_hid_ref.dtype

    @pl.when(l == 0)
    def _():
        h0 = jnp.dot(x_ref[...], w_in_ref[...],
                     preferred_element_type=jnp.float32) + b_in_ref[...]
        h0 = _layernorm(h0, g_in_ref[...], bt_in_ref[...], inv_h, n_pad)
        h_ref[...] = jnp.maximum(h0, 0.0)

    residual = h_ref[...]
    z = jnp.dot(residual.astype(cdt), w_hid_ref[0],
                preferred_element_type=jnp.float32) + b_hid_ref[pl.ds(l, 1), :]
    z = _layernorm(z, g_hid_ref[pl.ds(l, 1), :], bt_hid_ref[pl.ds(l, 1), :],
                   inv_h, n_pad)
    z = jnp.maximum(z, 0.0)
    # residual added only on odd layer indices, matching the PyTorch module
    parity = (l % 2).astype(jnp.float32)
    h_new = z + residual * parity
    h_ref[...] = h_new

    @pl.when(l == pl.num_programs(1) - 1)
    def _():
        out = jnp.dot(h_new.astype(cdt), w_out_ref[...],
                      preferred_element_type=jnp.float32) + b_out_ref[...]
        o_ref[...] = jnp.tanh(out)


# --------------------------------------------------------------------------- #
# Parameter preparation (call ONCE; hoists padding + bf16 cast out of the hot path)
# --------------------------------------------------------------------------- #
class PreparedParams(NamedTuple):
    w_in: jax.Array
    b_in: jax.Array
    g_in: jax.Array
    bt_in: jax.Array
    w_hid: jax.Array
    b_hid: jax.Array
    g_hid: jax.Array
    bt_hid: jax.Array
    w_out: jax.Array
    b_out: jax.Array
    input_size: int
    hidden_size: int
    output_size: int
    num_layers: int


def prepare_params(params, compute_dtype=jnp.bfloat16):
    (w_in, b_in, g_in, bt_in, w_hid, b_hid, g_hid, bt_hid, w_out, b_out) = params
    F, H = w_in.shape
    L = w_hid.shape[0]
    O = w_out.shape[1]
    F_pad, H_pad, O_pad = _round_up(F, 128), _round_up(H, 128), _round_up(O, 128)

    def row(v, n, n_pad):   # -> (1, n_pad) f32
        v = jnp.asarray(v, jnp.float32).reshape(1, n)
        return jnp.pad(v, ((0, 0), (0, n_pad - n)))

    def rows(v, n, n_pad):  # -> (L, n_pad) f32 (flattened from (L,1,n) if needed)
        v = jnp.asarray(v, jnp.float32).reshape(L, n)
        return jnp.pad(v, ((0, 0), (0, n_pad - n)))

    def mat(w, r, c, r_pad, c_pad):
        w = jnp.asarray(w, jnp.float32)
        return jnp.pad(w, ((0, r_pad - r), (0, c_pad - c))).astype(compute_dtype)

    w_hid_p = jnp.pad(jnp.asarray(w_hid, jnp.float32),
                      ((0, 0), (0, H_pad - H), (0, H_pad - H))).astype(compute_dtype)

    return PreparedParams(
        w_in=mat(w_in, F, H, F_pad, H_pad),
        b_in=row(b_in, H, H_pad),
        g_in=row(g_in, H, H_pad),
        bt_in=row(bt_in, H, H_pad),
        w_hid=w_hid_p,
        b_hid=rows(b_hid, H, H_pad),
        g_hid=rows(g_hid, H, H_pad),
        bt_hid=rows(bt_hid, H, H_pad),
        w_out=mat(w_out, H, O, H_pad, O_pad),
        b_out=row(b_out, O, O_pad),
        input_size=F, hidden_size=H, output_size=O, num_layers=L)


# --------------------------------------------------------------------------- #
# Wrapper
# --------------------------------------------------------------------------- #
def _vmem_budget_bytes():
    try:
        cap = int(pltpu.get_tpu_info().vmem_capacity_bytes)
    except Exception:
        cap = 64 << 20   # conservative default (v7x per-TensorCore VMEM)
    return int(0.85 * cap)


def _choose_tile_b(B, tile_b_max, quantum):
    tile_b_max = max(quantum, _round_up(tile_b_max, quantum))
    tile_b = min(tile_b_max, _round_up(B, quantum))
    B_pad = _round_up(B, tile_b)
    # prefer >= 2 grid steps: pipelines x/out DMA and shards across v7x's 2 TCs
    if B_pad // tile_b == 1 and tile_b >= 2 * quantum:
        tile_b = _round_up((tile_b + 1) // 2, quantum)
        B_pad = _round_up(B, tile_b)
    return tile_b, B_pad


def neural_net_res_norm(x, params, *, tile_b_max=256,
                        compute_dtype=jnp.bfloat16, force_stream=False):
    if not isinstance(params, PreparedParams):
        # fallback; for hot loops call prepare_params() once and pass the result
        params = prepare_params(params, compute_dtype)
    p = params
    F, H, O, L = p.input_size, p.hidden_size, p.output_size, p.num_layers
    F_pad, H_pad = p.w_in.shape
    O_pad = p.w_out.shape[1]
    cdt = p.w_in.dtype
    wbytes = jnp.dtype(cdt).itemsize
    n_pad_lanes = H_pad - H

    B = x.shape[0]
    quantum = 16 if wbytes < 4 else 8          # bf16 packs 2 rows/sublane
    tile_b, B_pad = _choose_tile_b(B, tile_b_max, quantum)
    nb = B_pad // tile_b

    x_p = jnp.pad(x, ((0, B_pad - B), (0, F_pad - F))).astype(cdt)

    # --- VMEM accounting (params single-buffered, x/out double-buffered) ------
    vec_bytes = (3 * H_pad + 3 * L * H_pad + O_pad) * 4
    act_bytes = 2 * tile_b * F_pad * wbytes + 2 * tile_b * O_pad * 4 \
        + 4 * tile_b * H_pad * 4
    resident_need = (F_pad * H_pad + L * H_pad * H_pad + H_pad * O_pad) * wbytes \
        + vec_bytes + act_bytes
    stream_need = (F_pad * H_pad + H_pad * O_pad + 2 * H_pad * H_pad) * wbytes \
        + vec_bytes + act_bytes + tile_b * H_pad * 4

    budget = _vmem_budget_bytes()
    use_stream = force_stream or (resident_need > budget)
    need = stream_need if use_stream else resident_need
    vmem_limit = int(min(budget, max(32 << 20, int(1.25 * need) + (2 << 20))))

    cost = pl.CostEstimate(
        flops=int(2 * B_pad * (F_pad * H_pad + L * H_pad * H_pad + H_pad * O_pad)),
        transcendentals=int(B_pad * (L + 1) + B_pad * O_pad),
        bytes_accessed=int(B_pad * F_pad * wbytes + B_pad * O_pad * 4
                           + (F_pad * H_pad + L * H_pad * H_pad + H_pad * O_pad) * wbytes
                           + vec_bytes),
    )

    PARAM1 = pl.Buffered(1)   # single-buffer grid-invariant parameter blocks

    if not use_stream:
        const2 = lambda i: (0, 0)
        const3 = lambda i: (0, 0, 0)
        in_specs = [
            pl.BlockSpec((tile_b, F_pad), lambda i: (i, 0)),
            pl.BlockSpec((F_pad, H_pad), const2, pipeline_mode=PARAM1),
            pl.BlockSpec((1, H_pad), const2, pipeline_mode=PARAM1),
            pl.BlockSpec((1, H_pad), const2, pipeline_mode=PARAM1),
            pl.BlockSpec((1, H_pad), const2, pipeline_mode=PARAM1),
            pl.BlockSpec((L, H_pad, H_pad), const3, pipeline_mode=PARAM1),
            pl.BlockSpec((L, H_pad), const2, pipeline_mode=PARAM1),
            pl.BlockSpec((L, H_pad), const2, pipeline_mode=PARAM1),
            pl.BlockSpec((L, H_pad), const2, pipeline_mode=PARAM1),
            pl.BlockSpec((H_pad, O_pad), const2, pipeline_mode=PARAM1),
            pl.BlockSpec((1, O_pad), const2, pipeline_mode=PARAM1),
        ]
        out_spec = pl.BlockSpec((tile_b, O_pad), lambda i: (i, 0))
        kernel = functools.partial(resnorm_resident_kernel,
                                   true_hidden=H, n_pad=n_pad_lanes)
        grid = (nb,)
        scratch = []
        dims = ("parallel",)
    else:
        cA = lambda i, l: (0, 0)
        in_specs = [
            pl.BlockSpec((tile_b, F_pad), lambda i, l: (i, 0)),
            pl.BlockSpec((F_pad, H_pad), cA, pipeline_mode=PARAM1),
            pl.BlockSpec((1, H_pad), cA, pipeline_mode=PARAM1),
            pl.BlockSpec((1, H_pad), cA, pipeline_mode=PARAM1),
            pl.BlockSpec((1, H_pad), cA, pipeline_mode=PARAM1),
            # streamed per layer (default double-buffering overlaps next layer's DMA)
            pl.BlockSpec((1, H_pad, H_pad), lambda i, l: (l, 0, 0)),
            pl.BlockSpec((L, H_pad), cA, pipeline_mode=PARAM1),
            pl.BlockSpec((L, H_pad), cA, pipeline_mode=PARAM1),
            pl.BlockSpec((L, H_pad), cA, pipeline_mode=PARAM1),
            pl.BlockSpec((H_pad, O_pad), cA, pipeline_mode=PARAM1),
            pl.BlockSpec((1, O_pad), cA, pipeline_mode=PARAM1),
        ]
        out_spec = pl.BlockSpec((tile_b, O_pad), lambda i, l: (i, 0))
        kernel = functools.partial(resnorm_stream_kernel,
                                   true_hidden=H, n_pad=n_pad_lanes)
        grid = (nb, L)
        scratch = [pltpu.VMEM((tile_b, H_pad), jnp.float32)]
        dims = ("parallel", "arbitrary")

    out_p = pl.pallas_call(
        kernel,
        out_shape=jax.ShapeDtypeStruct((B_pad, O_pad), jnp.float32),
        grid=grid,
        in_specs=in_specs,
        out_specs=out_spec,
        scratch_shapes=scratch,
        compiler_params=pltpu.CompilerParams(
            dimension_semantics=dims,
            vmem_limit_bytes=vmem_limit,
        ),
        cost_estimate=cost,
    )(x_p, p.w_in, p.b_in, p.g_in, p.bt_in,
      p.w_hid, p.b_hid, p.g_hid, p.bt_hid, p.w_out, p.b_out)

    return out_p[:B, :O]


# --------------------------------------------------------------------------- #
# Synthetic params + pure-JAX reference (PyTorch forward semantics)
# --------------------------------------------------------------------------- #
def init_params(key, input_size, hidden_size, output_size, num_layers):
    ks = jax.random.split(key, 2 + num_layers)

    def lin(k, fan_in, fan_out):
        bound = 1.0 / jnp.sqrt(fan_in)
        kw, kb = jax.random.split(k)
        w = jax.random.uniform(kw, (fan_in, fan_out), jnp.float32, -bound, bound)
        b = jax.random.uniform(kb, (fan_out,), jnp.float32, -bound, bound)
        return w, b

    w_in, b_in = lin(ks[0], input_size, hidden_size)
    b_in = b_in.reshape(1, hidden_size)
    g_in = jnp.ones((1, hidden_size), jnp.float32)
    bt_in = jnp.zeros((1, hidden_size), jnp.float32)

    w_hs, b_hs = [], []
    for i in range(num_layers):
        w, b = lin(ks[1 + i], hidden_size, hidden_size)
        w_hs.append(w)
        b_hs.append(b)
    w_hid = jnp.stack(w_hs)                                  # (L, H, H)
    b_hid = jnp.stack(b_hs)                                  # (L, H)
    g_hid = jnp.ones((num_layers, hidden_size), jnp.float32)
    bt_hid = jnp.zeros((num_layers, hidden_size), jnp.float32)

    w_out, b_out = lin(ks[1 + num_layers], hidden_size, output_size)
    b_out = b_out.reshape(1, output_size)
    return (w_in, b_in, g_in, bt_in, w_hid, b_hid, g_hid, bt_hid, w_out, b_out)


def reference_forward(x, params, matmul_dtype=jnp.float32):
    (w_in, b_in, g_in, bt_in, w_hid, b_hid, g_hid, bt_hid, w_out, b_out) = params
    inv_h = jnp.float32(1.0 / w_in.shape[1])

    def mm(a, w):
        return jnp.dot(a.astype(matmul_dtype), w.astype(matmul_dtype),
                       preferred_element_type=jnp.float32)

    def ln(h, g, bvec):
        mean = jnp.sum(h, axis=-1, keepdims=True) * inv_h
        d = h - mean
        var = jnp.sum(d * d, axis=-1, keepdims=True) * inv_h
        return d * jax.lax.rsqrt(var + EPS) * g + bvec

    h = mm(x, w_in) + b_in
    h = jnp.maximum(ln(h, g_in, bt_in), 0.0)
    for i in range(w_hid.shape[0]):
        residual = h
        h = mm(h, w_hid[i]) + b_hid[i]
        h = jnp.maximum(ln(h, g_hid[i], bt_hid[i]), 0.0)
        if i % 2 == 1:
            h = h + residual
    return jnp.tanh(mm(h, w_out) + b_out)


if __name__ == "__main__":
    key = jax.random.PRNGKey(0)

    # --- test 1: tiny shapes, resident path, static unroll, single batch tile
    B1, F1, H1, O1, L1 = 2, 8, 32, 4, 4
    k1, k2, key = jax.random.split(key, 3)
    x1 = jax.random.normal(k1, (B1, F1), jnp.float32)
    p1 = init_params(k2, F1, H1, O1, L1)
    prep1 = prepare_params(p1)                 # pad/cast ONCE, outside hot path
    out1 = jax.block_until_ready(neural_net_res_norm(x1, prep1))
    ref1_bf16 = reference_forward(x1, p1, matmul_dtype=jnp.bfloat16)
    ref1_f32 = reference_forward(x1, p1)
    assert out1.shape == (B1, O1)
    assert jnp.allclose(out1, ref1_bf16, atol=2e-3, rtol=2e-3)
    assert jnp.allclose(out1, ref1_f32, atol=1e-1, rtol=1e-1)  # loose: bf16 matmuls

    # --- test 2: deeper (odd) depth -> pair fori_loop path, multi-tile batch grid
    B2, L2 = 40, 18
    k3, k4, key = jax.random.split(key, 3)
    x2 = jax.random.normal(k3, (B2, F1), jnp.float32)
    p2 = init_params(k4, F1, H1, O1, L2)
    prep2 = prepare_params(p2)
    out2 = jax.block_until_ready(neural_net_res_norm(x2, prep2, tile_b_max=16))
    ref2 = reference_forward(x2, p2, matmul_dtype=jnp.bfloat16)
    assert out2.shape == (B2, O1)
    assert jnp.allclose(out2, ref2, atol=2e-3, rtol=2e-3)

    # --- test 3: forced per-layer weight streaming (v7x-style path), 2-D grid
    B3, L3 = 24, 16
    k5, k6 = jax.random.split(key)
    x3 = jax.random.normal(k5, (B3, F1), jnp.float32)
    p3 = init_params(k6, F1, H1, O1, L3)
    prep3 = prepare_params(p3)
    out3 = jax.block_until_ready(
        neural_net_res_norm(x3, prep3, tile_b_max=16, force_stream=True))
    ref3 = reference_forward(x3, p3, matmul_dtype=jnp.bfloat16)
    assert out3.shape == (B3, O1)
    assert jnp.allclose(out3, ref3, atol=2e-3, rtol=2e-3)

    print("KERNEL_OK")
</pallas_src>

<mosaic_0001>
module attributes {stable_mosaic.version = 11 : i64} {
  func.func @resnorm_resident_kernel(%arg0: i32, %arg1: memref<16x128xbf16, #tpu.memory_space<vmem>>, %arg2: memref<128x128xbf16, #tpu.memory_space<vmem>>, %arg3: memref<1x128xf32, #tpu.memory_space<vmem>>, %arg4: memref<1x128xf32, #tpu.memory_space<vmem>>, %arg5: memref<1x128xf32, #tpu.memory_space<vmem>>, %arg6: memref<4x128x128xbf16, #tpu.memory_space<vmem>>, %arg7: memref<4x128xf32, #tpu.memory_space<vmem>>, %arg8: memref<4x128xf32, #tpu.memory_space<vmem>>, %arg9: memref<4x128xf32, #tpu.memory_space<vmem>>, %arg10: memref<128x128xbf16, #tpu.memory_space<vmem>>, %arg11: memref<1x128xf32, #tpu.memory_space<vmem>>, %arg12: memref<16x128xf32, #tpu.memory_space<vmem>>) attributes {dimension_semantics = [#tpu.dimension_semantics<parallel>], iteration_bounds = array<i64: 1>, scalar_prefetch = 0 : i64, scratch_operands = 0 : i64, tpu.core_type = #tpu.core_type<tc>, window_params = [{transform_indices = @transform_0, window_bounds = array<i64: 16, 128>}, {pipeline_mode = #tpu.pipeline_mode<synchronous>, transform_indices = @transform_1, window_bounds = array<i64: 128, 128>}, {pipeline_mode = #tpu.pipeline_mode<synchronous>, transform_indices = @transform_2, window_bounds = array<i64: 1, 128>}, {pipeline_mode = #tpu.pipeline_mode<synchronous>, transform_indices = @transform_3, window_bounds = array<i64: 1, 128>}, {pipeline_mode = #tpu.pipeline_mode<synchronous>, transform_indices = @transform_4, window_bounds = array<i64: 1, 128>}, {pipeline_mode = #tpu.pipeline_mode<synchronous>, transform_indices = @transform_5, window_bounds = array<i64: 4, 128, 128>}, {pipeline_mode = #tpu.pipeline_mode<synchronous>, transform_indices = @transform_6, window_bounds = array<i64: 4, 128>}, {pipeline_mode = #tpu.pipeline_mode<synchronous>, transform_indices = @transform_7, window_bounds = array<i64: 4, 128>}, {pipeline_mode = #tpu.pipeline_mode<synchronous>, transform_indices = @transform_8, window_bounds = array<i64: 4, 128>}, {pipeline_mode = #tpu.pipeline_mode<synchronous>, transform_indices = @transform_9, window_bounds = array<i64: 128, 128>}, {pipeline_mode = #tpu.pipeline_mode<synchronous>, transform_indices = @transform_10, window_bounds = array<i64: 1, 128>}, {transform_indices = @transform_11, window_bounds = array<i64: 16, 128>}]} {
    %c0 = arith.constant 0 : index
    %c0_0 = arith.constant 0 : index
    %0 = vector.load %arg1[%c0, %c0_0] : memref<16x128xbf16, #tpu.memory_space<vmem>>, vector<16x128xbf16>
    %c0_1 = arith.constant 0 : index
    %c0_2 = arith.constant 0 : index
    %1 = vector.load %arg2[%c0_1, %c0_2] : memref<128x128xbf16, #tpu.memory_space<vmem>>, vector<128x128xbf16>
    %cst = arith.constant dense<0.000000e+00> : vector<16x128xf32>
    %2 = tpu.matmul %0, %1, %cst {dimension_numbers = #tpu.dot_dimension_numbers<[1], [0], [0], [1], [0, 0, 1, 1], [], []>} : vector<16x128xbf16>, vector<128x128xbf16>, vector<16x128xf32> -> vector<16x128xf32>
    %c0_3 = arith.constant 0 : index
    %c0_4 = arith.constant 0 : index
    %3 = vector.load %arg3[%c0_3, %c0_4] : memref<1x128xf32, #tpu.memory_space<vmem>>, vector<1x128xf32>
    %4 = vector.broadcast %3 : vector<1x128xf32> to vector<16x128xf32>
    %5 = arith.addf %2, %4 : vector<16x128xf32>
    %c0_5 = arith.constant 0 : index
    %c0_6 = arith.constant 0 : index
    %6 = vector.load %arg4[%c0_5, %c0_6] : memref<1x128xf32, #tpu.memory_space<vmem>>, vector<1x128xf32>
    %c0_7 = arith.constant 0 : index
    %c0_8 = arith.constant 0 : index
    %7 = vector.load %arg5[%c0_7, %c0_8] : memref<1x128xf32, #tpu.memory_space<vmem>>, vector<1x128xf32>
    %cst_9 = arith.constant dense<0.000000e+00> : vector<16xf32>
    %8 = vector.multi_reduction <add>, %5, %cst_9 [1] : vector<16x128xf32> to vector<16xf32>
    %9 = vector.shape_cast %8 : vector<16xf32> to vector<16x1xf32>
    %cst_10 = arith.constant 3.125000e-02 : f32
    %10 = vector.broadcast %cst_10 : f32 to vector<16x1xf32>
    %11 = arith.mulf %9, %10 : vector<16x1xf32>
    %12 = vector.broadcast %11 : vector<16x1xf32> to vector<16x128xf32>
    %13 = arith.subf %5, %12 : vector<16x128xf32>
    %14 = arith.mulf %13, %13 : vector<16x128xf32>
    %cst_11 = arith.constant dense<0.000000e+00> : vector<16xf32>
    %15 = vector.multi_reduction <add>, %14, %cst_11 [1] : vector<16x128xf32> to vector<16xf32>
    %16 = vector.shape_cast %15 : vector<16xf32> to vector<16x1xf32>
    %cst_12 = arith.constant 3.125000e-02 : f32
    %17 = vector.broadcast %cst_12 : f32 to vector<16x1xf32>
    %18 = arith.mulf %16, %17 : vector<16x1xf32>
    %cst_13 = arith.constant 9.600000e+01 : f32
    %cst_14 = arith.constant 3.125000e-02 : f32
    %19 = arith.mulf %cst_13, %cst_14 : f32
    %20 = arith.mulf %11, %11 : vector<16x1xf32>
    %21 = vector.broadcast %19 : f32 to vector<16x1xf32>
    %22 = arith.mulf %21, %20 : vector<16x1xf32>
    %23 = arith.subf %18, %22 : vector<16x1xf32>
    %cst_15 = arith.constant 0.000000e+00 : f32
    %24 = vector.broadcast %cst_15 : f32 to vector<16x1xf32>
    %25 = arith.maximumf %23, %24 : vector<16x1xf32>
    %cst_16 = arith.constant 9.99999974E-6 : f32
    %26 = vector.broadcast %cst_16 : f32 to vector<16x1xf32>
    %27 = arith.addf %25, %26 : vector<16x1xf32>
    %28 = math.rsqrt %27 : vector<16x1xf32>
    %29 = vector.broadcast %28 : vector<16x1xf32> to vector<16x128xf32>
    %30 = arith.mulf %13, %29 : vector<16x128xf32>
    %31 = vector.broadcast %6 : vector<1x128xf32> to vector<16x128xf32>
    %32 = arith.mulf %30, %31 : vector<16x128xf32>
    %33 = vector.broadcast %7 : vector<1x128xf32> to vector<16x128xf32>
    %34 = arith.addf %32, %33 : vector<16x128xf32>
    %cst_17 = arith.constant 0.000000e+00 : f32
    %35 = vector.broadcast %cst_17 : f32 to vector<16x128xf32>
    %36 = arith.maximumf %34, %35 : vector<16x128xf32>
    %37 = arith.truncf %36 : vector<16x128xf32> to vector<16x128xbf16>
    %c0_18 = arith.constant 0 : index
    %c0_19 = arith.constant 0 : index
    %c0_20 = arith.constant 0 : index
    %38 = vector.load %arg6[%c0_18, %c0_19, %c0_20] : memref<4x128x128xbf16, #tpu.memory_space<vmem>>, vector<1x128x128xbf16>
    %39 = vector.shape_cast %38 : vector<1x128x128xbf16> to vector<128x128xbf16>
    %cst_21 = arith.constant dense<0.000000e+00> : vector<16x128xf32>
    %40 = tpu.matmul %37, %39, %cst_21 {dimension_numbers = #tpu.dot_dimension_numbers<[1], [0], [0], [1], [0, 0, 1, 1], [], []>} : vector<16x128xbf16>, vector<128x128xbf16>, vector<16x128xf32> -> vector<16x128xf32>
    %c0_22 = arith.constant 0 : index
    %c0_23 = arith.constant 0 : index
    %41 = vector.load %arg7[%c0_22, %c0_23] : memref<4x128xf32, #tpu.memory_space<vmem>>, vector<1x128xf32>
    %42 = vector.broadcast %41 : vector<1x128xf32> to vector<16x128xf32>
    %43 = arith.addf %40, %42 : vector<16x128xf32>
    %c0_24 = arith.constant 0 : index
    %c0_25 = arith.constant 0 : index
    %44 = vector.load %arg8[%c0_24, %c0_25] : memref<4x128xf32, #tpu.memory_space<vmem>>, vector<1x128xf32>
    %c0_26 = arith.constant 0 : index
    %c0_27 = arith.constant 0 : index
    %45 = vector.load %arg9[%c0_26, %c0_27] : memref<4x128xf32, #tpu.memory_space<vmem>>, vector<1x128xf32>
    %cst_28 = arith.constant dense<0.000000e+00> : vector<16xf32>
    %46 = vector.multi_reduction <add>, %43, %cst_28 [1] : vector<16x128xf32> to vector<16xf32>
    %47 = vector.shape_cast %46 : vector<16xf32> to vector<16x1xf32>
    %cst_29 = arith.constant 3.125000e-02 : f32
    %48 = vector.broadcast %cst_29 : f32 to vector<16x1xf32>
    %49 = arith.mulf %47, %48 : vector<16x1xf32>
    %50 = vector.broadcast %49 : vector<16x1xf32> to vector<16x128xf32>
    %51 = arith.subf %43, %50 : vector<16x128xf32>
    %52 = arith.mulf %51, %51 : vector<16x128xf32>
    %cst_30 = arith.constant dense<0.000000e+00> : vector<16xf32>
    %53 = vector.multi_reduction <add>, %52, %cst_30 [1] : vector<16x128xf32> to vector<16xf32>
    %54 = vector.shape_cast %53 : vector<16xf32> to vector<16x1xf32>
    %cst_31 = arith.constant 3.125000e-02 : f32
    %55 = vector.broadcast %cst_31 : f32 to vector<16x1xf32>
    %56 = arith.mulf %54, %55 : vector<16x1xf32>
    %cst_32 = arith.constant 9.600000e+01 : f32
    %cst_33 = arith.constant 3.125000e-02 : f32
    %57 = arith.mulf %cst_32, %cst_33 : f32
    %58 = arith.mulf %49, %49 : vector<16x1xf32>
    %59 = vector.broadcast %57 : f32 to vector<16x1xf32>
    %60 = arith.mulf %59, %58 : vector<16x1xf32>
    %61 = arith.subf %56, %60 : vector<16x1xf32>
    %cst_34 = arith.constant 0.000000e+00 : f32
    %62 = vector.broadcast %cst_34 : f32 to vector<16x1xf32>
    %63 = arith.maximumf %61, %62 : vector<16x1xf32>
    %cst_35 = arith.constant 9.99999974E-6 : f32
    %64 = vector.broadcast %cst_35 : f32 to vector<16x1xf32>
    %65 = arith.addf %63, %64 : vector<16x1xf32>
    %66 = math.rsqrt %65 : vector<16x1xf32>
    %67 = vector.broadcast %66 : vector<16x1xf32> to vector<16x128xf32>
    %68 = arith.mulf %51, %67 : vector<16x128xf32>
    %69 = vector.broadcast %44 : vector<1x128xf32> to vector<16x128xf32>
    %70 = arith.mulf %68, %69 : vector<16x128xf32>
    %71 = vector.broadcast %45 : vector<1x128xf32> to vector<16x128xf32>
    %72 = arith.addf %70, %71 : vector<16x128xf32>
    %cst_36 = arith.constant 0.000000e+00 : f32
    %73 = vector.broadcast %cst_36 : f32 to vector<16x128xf32>
    %74 = arith.maximumf %72, %73 : vector<16x128xf32>
    %75 = arith.truncf %74 : vector<16x128xf32> to vector<16x128xbf16>
    %c1 = arith.constant 1 : index
    %c0_37 = arith.constant 0 : index
    %c0_38 = arith.constant 0 : index
    %76 = vector.load %arg6[%c1, %c0_37, %c0_38] : memref<4x128x128xbf16, #tpu.memory_space<vmem>>, vector<1x128x128xbf16>
    %77 = vector.shape_cast %76 : vector<1x128x128xbf16> to vector<128x128xbf16>
    %cst_39 = arith.constant dense<0.000000e+00> : vector<16x128xf32>
    %78 = tpu.matmul %75, %77, %cst_39 {dimension_numbers = #tpu.dot_dimension_numbers<[1], [0], [0], [1], [0, 0, 1, 1], [], []>} : vector<16x128xbf16>, vector<128x128xbf16>, vector<16x128xf32> -> vector<16x128xf32>
    %c1_40 = arith.constant 1 : index
    %c0_41 = arith.constant 0 : index
    %79 = vector.load %arg7[%c1_40, %c0_41] : memref<4x128xf32, #tpu.memory_space<vmem>>, vector<1x128xf32>
    %80 = vector.broadcast %79 : vector<1x128xf32> to vector<16x128xf32>
    %81 = arith.addf %78, %80 : vector<16x128xf32>
    %c1_42 = arith.constant 1 : index
    %c0_43 = arith.constant 0 : index
    %82 = vector.load %arg8[%c1_42, %c0_43] : memref<4x128xf32, #tpu.memory_space<vmem>>, vector<1x128xf32>
    %c1_44 = arith.constant 1 : index
    %c0_45 = arith.constant 0 : index
    %83 = vector.load %arg9[%c1_44, %c0_45] : memref<4x128xf32, #tpu.memory_space<vmem>>, vector<1x128xf32>
    %cst_46 = arith.constant dense<0.000000e+00> : vector<16xf32>
    %84 = vector.multi_reduction <add>, %81, %cst_46 [1] : vector<16x128xf32> to vector<16xf32>
    %85 = vector.shape_cast %84 : vector<16xf32> to vector<16x1xf32>
    %cst_47 = arith.constant 3.125000e-02 : f32
    %86 = vector.broadcast %cst_47 : f32 to vector<16x1xf32>
    %87 = arith.mulf %85, %86 : vector<16x1xf32>
    %88 = vector.broadcast %87 : vector<16x1xf32> to vector<16x128xf32>
    %89 = arith.subf %81, %88 : vector<16x128xf32>
    %90 = arith.mulf %89, %89 : vector<16x128xf32>
    %cst_48 = arith.constant dense<0.000000e+00> : vector<16xf32>
    %91 = vector.multi_reduction <add>, %90, %cst_48 [1] : vector<16x128xf32> to vector<16xf32>
    %92 = vector.shape_cast %91 : vector<16xf32> to vector<16x1xf32>
    %cst_49 = arith.constant 3.125000e-02 : f32
    %93 = vector.broadcast %cst_49 : f32 to vector<16x1xf32>
    %94 = arith.mulf %92, %93 : vector<16x1xf32>
    %cst_50 = arith.constant 9.600000e+01 : f32
    %cst_51 = arith.constant 3.125000e-02 : f32
    %95 = arith.mulf %cst_50, %cst_51 : f32
    %96 = arith.mulf %87, %87 : vector<16x1xf32>
    %97 = vector.broadcast %95 : f32 to vector<16x1xf32>
    %98 = arith.mulf %97, %96 : vector<16x1xf32>
    %99 = arith.subf %94, %98 : vector<16x1xf32>
    %cst_52 = arith.constant 0.000000e+00 : f32
    %100 = vector.broadcast %cst_52 : f32 to vector<16x1xf32>
    %101 = arith.maximumf %99, %100 : vector<16x1xf32>
    %cst_53 = arith.constant 9.99999974E-6 : f32
    %102 = vector.broadcast %cst_53 : f32 to vector<16x1xf32>
    %103 = arith.addf %101, %102 : vector<16x1xf32>
    %104 = math.rsqrt %103 : vector<16x1xf32>
    %105 = vector.broadcast %104 : vector<16x1xf32> to vector<16x128xf32>
    %106 = arith.mulf %89, %105 : vector<16x128xf32>
    %107 = vector.broadcast %82 : vector<1x128xf32> to vector<16x128xf32>
    %108 = arith.mulf %106, %107 : vector<16x128xf32>
    %109 = vector.broadcast %83 : vector<1x128xf32> to vector<16x128xf32>
    %110 = arith.addf %108, %109 : vector<16x128xf32>
    %cst_54 = arith.constant 0.000000e+00 : f32
    %111 = vector.broadcast %cst_54 : f32 to vector<16x128xf32>
    %112 = arith.maximumf %110, %111 : vector<16x128xf32>
    %113 = arith.addf %112, %74 : vector<16x128xf32>
    %114 = arith.truncf %113 : vector<16x128xf32> to vector<16x128xbf16>
    %c2 = arith.constant 2 : index
    %c0_55 = arith.constant 0 : index
    %c0_56 = arith.constant 0 : index
    %115 = vector.load %arg6[%c2, %c0_55, %c0_56] : memref<4x128x128xbf16, #tpu.memory_space<vmem>>, vector<1x128x128xbf16>
    %116 = vector.shape_cast %115 : vector<1x128x128xbf16> to vector<128x128xbf16>
    %cst_57 = arith.constant dense<0.000000e+00> : vector<16x128xf32>
    %117 = tpu.matmul %114, %116, %cst_57 {dimension_numbers = #tpu.dot_dimension_numbers<[1], [0], [0], [1], [0, 0, 1, 1], [], []>} : vector<16x128xbf16>, vector<128x128xbf16>, vector<16x128xf32> -> vector<16x128xf32>
    %c2_58 = arith.constant 2 : index
    %c0_59 = arith.constant 0 : index
    %118 = vector.load %arg7[%c2_58, %c0_59] : memref<4x128xf32, #tpu.memory_space<vmem>>, vector<1x128xf32>
    %119 = vector.broadcast %118 : vector<1x128xf32> to vector<16x128xf32>
    %120 = arith.addf %117, %119 : vector<16x128xf32>
    %c2_60 = arith.constant 2 : index
    %c0_61 = arith.constant 0 : index
    %121 = vector.load %arg8[%c2_60, %c0_61] : memref<4x128xf32, #tpu.memory_space<vmem>>, vector<1x128xf32>
    %c2_62 = arith.constant 2 : index
    %c0_63 = arith.constant 0 : index
    %122 = vector.load %arg9[%c2_62, %c0_63] : memref<4x128xf32, #tpu.memory_space<vmem>>, vector<1x128xf32>
    %cst_64 = arith.constant dense<0.000000e+00> : vector<16xf32>
    %123 = vector.multi_reduction <add>, %120, %cst_64 [1] : vector<16x128xf32> to vector<16xf32>
    %124 = vector.shape_cast %123 : vector<16xf32> to vector<16x1xf32>
    %cst_65 = arith.constant 3.125000e-02 : f32
    %125 = vector.broadcast %cst_65 : f32 to vector<16x1xf32>
    %126 = arith.mulf %124, %125 : vector<16x1xf32>
    %127 = vector.broadcast %126 : vector<16x1xf32> to vector<16x128xf32>
    %128 = arith.subf %120, %127 : vector<16x128xf32>
    %129 = arith.mulf %128, %128 : vector<16x128xf32>
    %cst_66 = arith.constant dense<0.000000e+00> : vector<16xf32>
    %130 = vector.multi_reduction <add>, %129, %cst_66 [1] : vector<16x128xf32> to vector<16xf32>
    %131 = vector.shape_cast %130 : vector<16xf32> to vector<16x1xf32>
    %cst_67 = arith.constant 3.125000e-02 : f32
    %132 = vector.broadcast %cst_67 : f32 to vector<16x1xf32>
    %133 = arith.mulf %131, %132 : vector<16x1xf32>
    %cst_68 = arith.constant 9.600000e+01 : f32
    %cst_69 = arith.constant 3.125000e-02 : f32
    %134 = arith.mulf %cst_68, %cst_69 : f32
    %135 = arith.mulf %126, %126 : vector<16x1xf32>
    %136 = vector.broadcast %134 : f32 to vector<16x1xf32>
    %137 = arith.mulf %136, %135 : vector<16x1xf32>
    %138 = arith.subf %133, %137 : vector<16x1xf32>
    %cst_70 = arith.constant 0.000000e+00 : f32
    %139 = vector.broadcast %cst_70 : f32 to vector<16x1xf32>
    %140 = arith.maximumf %138, %139 : vector<16x1xf32>
    %cst_71 = arith.constant 9.99999974E-6 : f32
    %141 = vector.broadcast %cst_71 : f32 to vector<16x1xf32>
    %142 = arith.addf %140, %141 : vector<16x1xf32>
    %143 = math.rsqrt %142 : vector<16x1xf32>
    %144 = vector.broadcast %143 : vector<16x1xf32> to vector<16x128xf32>
    %145 = arith.mulf %128, %144 : vector<16x128xf32>
    %146 = vector.broadcast %121 : vector<1x128xf32> to vector<16x128xf32>
    %147 = arith.mulf %145, %146 : vector<16x128xf32>
    %148 = vector.broadcast %122 : vector<1x128xf32> to vector<16x128xf32>
    %149 = arith.addf %147, %148 : vector<16x128xf32>
    %cst_72 = arith.constant 0.000000e+00 : f32
    %150 = vector.broadcast %cst_72 : f32 to vector<16x128xf32>
    %151 = arith.maximumf %149, %150 : vector<16x128xf32>
    %152 = arith.truncf %151 : vector<16x128xf32> to vector<16x128xbf16>
    %c3 = arith.constant 3 : index
    %c0_73 = arith.constant 0 : index
    %c0_74 = arith.constant 0 : index
    %153 = vector.load %arg6[%c3, %c0_73, %c0_74] : memref<4x128x128xbf16, #tpu.memory_space<vmem>>, vector<1x128x128xbf16>
    %154 = vector.shape_cast %153 : vector<1x128x128xbf16> to vector<128x128xbf16>
    %cst_75 = arith.constant dense<0.000000e+00> : vector<16x128xf32>
    %155 = tpu.matmul %152, %154, %cst_75 {dimension_numbers = #tpu.dot_dimension_numbers<[1], [0], [0], [1], [0, 0, 1, 1], [], []>} : vector<16x128xbf16>, vector<128x128xbf16>, vector<16x128xf32> -> vector<16x128xf32>
    %c3_76 = arith.constant 3 : index
    %c0_77 = arith.constant 0 : index
    %156 = vector.load %arg7[%c3_76, %c0_77] : memref<4x128xf32, #tpu.memory_space<vmem>>, vector<1x128xf32>
    %157 = vector.broadcast %156 : vector<1x128xf32> to vector<16x128xf32>
    %158 = arith.addf %155, %157 : vector<16x128xf32>
    %c3_78 = arith.constant 3 : index
    %c0_79 = arith.constant 0 : index
    %159 = vector.load %arg8[%c3_78, %c0_79] : memref<4x128xf32, #tpu.memory_space<vmem>>, vector<1x128xf32>
    %c3_80 = arith.constant 3 : index
    %c0_81 = arith.constant 0 : index
    %160 = vector.load %arg9[%c3_80, %c0_81] : memref<4x128xf32, #tpu.memory_space<vmem>>, vector<1x128xf32>
    %cst_82 = arith.constant dense<0.000000e+00> : vector<16xf32>
    %161 = vector.multi_reduction <add>, %158, %cst_82 [1] : vector<16x128xf32> to vector<16xf32>
    %162 = vector.shape_cast %161 : vector<16xf32> to vector<16x1xf32>
    %cst_83 = arith.constant 3.125000e-02 : f32
    %163 = vector.broadcast %cst_83 : f32 to vector<16x1xf32>
    %164 = arith.mulf %162, %163 : vector<16x1xf32>
    %165 = vector.broadcast %164 : vector<16x1xf32> to vector<16x128xf32>
    %166 = arith.subf %158, %165 : vector<16x128xf32>
    %167 = arith.mulf %166, %166 : vector<16x128xf32>
    %cst_84 = arith.constant dense<0.000000e+00> : vector<16xf32>
    %168 = vector.multi_reduction <add>, %167, %cst_84 [1] : vector<16x128xf32> to vector<16xf32>
    %169 = vector.shape_cast %168 : vector<16xf32> to vector<16x1xf32>
    %cst_85 = arith.constant 3.125000e-02 : f32
    %170 = vector.broadcast %cst_85 : f32 to vector<16x1xf32>
    %171 = arith.mulf %169, %170 : vector<16x1xf32>
    %cst_86 = arith.constant 9.600000e+01 : f32
    %cst_87 = arith.constant 3.125000e-02 : f32
    %172 = arith.mulf %cst_86, %cst_87 : f32
    %173 = arith.mulf %164, %164 : vector<16x1xf32>
    %174 = vector.broadcast %172 : f32 to vector<16x1xf32>
    %175 = arith.mulf %174, %173 : vector<16x1xf32>
    %176 = arith.subf %171, %175 : vector<16x1xf32>
    %cst_88 = arith.constant 0.000000e+00 : f32
    %177 = vector.broadcast %cst_88 : f32 to vector<16x1xf32>
    %178 = arith.maximumf %176, %177 : vector<16x1xf32>
    %cst_89 = arith.constant 9.99999974E-6 : f32
    %179 = vector.broadcast %cst_89 : f32 to vector<16x1xf32>
    %180 = arith.addf %178, %179 : vector<16x1xf32>
    %181 = math.rsqrt %180 : vector<16x1xf32>
    %182 = vector.broadcast %181 : vector<16x1xf32> to vector<16x128xf32>
    %183 = arith.mulf %166, %182 : vector<16x128xf32>
    %184 = vector.broadcast %159 : vector<1x128xf32> to vector<16x128xf32>
    %185 = arith.mulf %183, %184 : vector<16x128xf32>
    %186 = vector.broadcast %160 : vector<1x128xf32> to vector<16x128xf32>
    %187 = arith.addf %185, %186 : vector<16x128xf32>
    %cst_90 = arith.constant 0.000000e+00 : f32
    %188 = vector.broadcast %cst_90 : f32 to vector<16x128xf32>
    %189 = arith.maximumf %187, %188 : vector<16x128xf32>
    %190 = arith.addf %189, %151 : vector<16x128xf32>
    %191 = arith.truncf %190 : vector<16x128xf32> to vector<16x128xbf16>
    %c0_91 = arith.constant 0 : index
    %c0_92 = arith.constant 0 : index
    %192 = vector.load %arg10[%c0_91, %c0_92] : memref<128x128xbf16, #tpu.memory_space<vmem>>, vector<128x128xbf16>
    %cst_93 = arith.constant dense<0.000000e+00> : vector<16x128xf32>
    %193 = tpu.matmul %191, %192, %cst_93 {dimension_numbers = #tpu.dot_dimension_numbers<[1], [0], [0], [1], [0, 0, 1, 1], [], []>} : vector<16x128xbf16>, vector<128x128xbf16>, vector<16x128xf32> -> vector<16x128xf32>
    %c0_94 = arith.constant 0 : index
    %c0_95 = arith.constant 0 : index
    %194 = vector.load %arg11[%c0_94, %c0_95] : memref<1x128xf32, #tpu.memory_space<vmem>>, vector<1x128xf32>
    %195 = vector.broadcast %194 : vector<1x128xf32> to vector<16x128xf32>
    %196 = arith.addf %193, %195 : vector<16x128xf32>
    %197 = math.tanh %196 : vector<16x128xf32>
    %c0_96 = arith.constant 0 : index
    %c0_97 = arith.constant 0 : index
    %198 = vector.load %arg12[%c0_96, %c0_97] : memref<16x128xf32, #tpu.memory_space<vmem>>, vector<16x128xf32>
    tpu.vector_store %arg12[%c0_96, %c0_97], %197 {strides = array<i32>} : memref<16x128xf32, #tpu.memory_space<vmem>>, vector<16x128xf32>,
    return
  }
  func.func @transform_0(%arg0: i32) -> (i32, i32) {
    %c0_i32 = arith.constant 0 : i32
    %c0_i32_0 = arith.constant 0 : i32
    return %arg0, %c0_i32 : i32, i32
  }
  func.func @transform_1(%arg0: i32) -> (i32, i32) {
    %c0_i32 = arith.constant 0 : i32
    %c0_i32_0 = arith.constant 0 : i32
    %c0_i32_1 = arith.constant 0 : i32
    return %c0_i32, %c0_i32_0 : i32, i32
  }
  func.func @transform_2(%arg0: i32) -> (i32, i32) {
    %c0_i32 = arith.constant 0 : i32
    %c0_i32_0 = arith.constant 0 : i32
    %c0_i32_1 = arith.constant 0 : i32
    return %c0_i32, %c0_i32_0 : i32, i32
  }
  func.func @transform_3(%arg0: i32) -> (i32, i32) {
    %c0_i32 = arith.constant 0 : i32
    %c0_i32_0 = arith.constant 0 : i32
    %c0_i32_1 = arith.constant 0 : i32
    return %c0_i32, %c0_i32_0 : i32, i32
  }
  func.func @transform_4(%arg0: i32) -> (i32, i32) {
    %c0_i32 = arith.constant 0 : i32
    %c0_i32_0 = arith.constant 0 : i32
    %c0_i32_1 = arith.constant 0 : i32
    return %c0_i32, %c0_i32_0 : i32, i32
  }
  func.func @transform_5(%arg0: i32) -> (i32, i32, i32) {
    %c0_i32 = arith.constant 0 : i32
    %c0_i32_0 = arith.constant 0 : i32
    %c0_i32_1 = arith.constant 0 : i32
    %c0_i32_2 = arith.constant 0 : i32
    return %c0_i32, %c0_i32_0, %c0_i32_1 : i32, i32, i32
  }
  func.func @transform_6(%arg0: i32) -> (i32, i32) {
    %c0_i32 = arith.constant 0 : i32
    %c0_i32_0 = arith.constant 0 : i32
    %c0_i32_1 = arith.constant 0 : i32
    return %c0_i32, %c0_i32_0 : i32, i32
  }
  func.func @transform_7(%arg0: i32) -> (i32, i32) {
    %c0_i32 = arith.constant 0 : i32
    %c0_i32_0 = arith.constant 0 : i32
    %c0_i32_1 = arith.constant 0 : i32
    return %c0_i32, %c0_i32_0 : i32, i32
  }
  func.func @transform_8(%arg0: i32) -> (i32, i32) {
    %c0_i32 = arith.constant 0 : i32
    %c0_i32_0 = arith.constant 0 : i32
    %c0_i32_1 = arith.constant 0 : i32
    return %c0_i32, %c0_i32_0 : i32, i32
  }
  func.func @transform_9(%arg0: i32) -> (i32, i32) {
    %c0_i32 = arith.constant 0 : i32
    %c0_i32_0 = arith.constant 0 : i32
    %c0_i32_1 = arith.constant 0 : i32
    return %c0_i32, %c0_i32_0 : i32, i32
  }
  func.func @transform_10(%arg0: i32) -> (i32, i32) {
    %c0_i32 = arith.constant 0 : i32
    %c0_i32_0 = arith.constant 0 : i32
    %c0_i32_1 = arith.constant 0 : i32
    return %c0_i32, %c0_i32_0 : i32, i32
  }
  func.func @transform_11(%arg0: i32) -> (i32, i32) {
    %c0_i32 = arith.constant 0 : i32
    %c0_i32_0 = arith.constant 0 : i32
    return %arg0, %c0_i32 : i32, i32
  }
}

</mosaic_0001>

<bundles_post_ra>
// kernel: tpu_custom_call.1
= control target key start
LH: loop header
LB: loop body
LE: loop exit
PB: predicated region body
PF: predicated region fallthrough
CT: control target
= control target key end

     0   :  { %16 = vsyncpa [#allocation3], 0  ;;  %s1804_s0 = inlined_call_operand.hbm [shape: bf16[16,128], index: 0, kind: input, shape index: {}]   ;;  %s1805_s1 = inlined_call_operand.hbm [shape: bf16[128,128], index: 1, kind: input, shape index: {}]   ;;  %s1806_s2 = inlined_call_operand.hbm [shape: f32[1,128], index: 2, kind: input, shape index: {}]   ;;  %s1807_s3 = inlined_call_operand.hbm [shape: f32[1,128], index: 3, kind: input, shape index: {}]   ;;  %s1808_s4 = inlined_call_operand.hbm [shape: f32[1,128], index: 4, kind: input, shape index: {}]   ;;  %s1809_s5 = inlined_call_operand.hbm [shape: bf16[4,128,128], index: 5, kind: input, shape index: {}]   ;;  %s1810_s6 = inlined_call_operand.vmem [shape: f32[4,128], index: 6, kind: input, shape index: {}]   ;;  %s1811_s7 = inlined_call_operand.vmem [shape: f32[4,128], index: 7, kind: input, shape index: {}]   ;;  %s1812_s8 = inlined_call_operand.vmem [shape: f32[4,128], index: 8, kind: input, shape index: {}]   ;;  %s1813_s9 = inlined_call_operand.hbm [shape: bf16[128,128], index: 9, kind: input, shape index: {}]   ;;  %s1814_s10 = inlined_call_operand.vmem [shape: f32[1,128], index: 10, kind: input, shape index: {}]   ;;  %s1815_s11 = inlined_call_operand.hbm [shape: f32[16,128], index: 11, kind: output, shape index: {}]  }
   0x1   :  { %17 = vsyncpa [#allocation6], 0 }
   0x2   :  { %18 = vsyncpa [#allocation9], 0 }
   0x3   :  { %19 = vsyncpa [#allocation12], 0 }
   0x4   :  { %20 = vsyncpa [#allocation4], 0  ;;  %s1567_s17 = smov [#allocation5]   ;;  %s1568_s19 = smov [#allocation8]  }
   0x5   :  { %s38_s18 = sshll.u32 %s1567_s17, 4  ;;  %s61_s20 = sshll.u32 %s1568_s19, 4  ;;  %s39_s18 = int_to_ptr.vmem [resolvable:$true] %s38_s18  ;;  %s62_s20 = int_to_ptr.vmem [resolvable:$true] %s61_s20 }
   0x6   :  { %s1405_s21 = scalar_lea.vmem %s39_s18, 1024  ;;  %p1410_p1 = scmp.lt.s32.totalorder %s39_s18, %s39_s18 }
   0x7   :  { %p1406_p0 = scmp.ne.s32.totalorder %s39_s18, %s1405_s21  ;;  %p1411_p2 = scmp.lt.s32.totalorder %s1405_s21, %s1405_s21 }
   0x9   :  { %p1412_p3 = por %p1411_p2, %p1410_p1 }
   0xb   :  { %p1413_p4 = pnand %p1412_p3, %p1406_p0 }
   0xd   :  { %1416 = shalt.err (!%p1413_p4)
}
   0xe   :  { %s1569_s22 = smov 64   ;;  %s1570_s23 = smov 4  }
   0xf   :  { %44 = dma.hbm_to_vmem [thread:$0]  %s1805_s1, 1024, %s39_s18, [#allocation6], %s1569_s22, %s1569_s22, %s1570_s23  }
  0x10   :  { %s1425_s26 = scalar_lea.vmem %s62_s20, 16  ;;  %s1429_s27 = scalar_lea.vmem %s62_s20, 32 }
  0x11   :  { %p1426_p5 = scmp.ne.s32.totalorder %s62_s20, %s1425_s26  ;;  %p1430_p6 = scmp.lt.s32.totalorder %s62_s20, %s62_s20 }
  0x12   :  { %p1431_p7 = scmp.lt.s32.totalorder %s1429_s27, %s1425_s26 }
  0x14   :  { %p1432_p8 = por %p1431_p7, %p1430_p6 }
  0x16   :  { %p1433_p9 = pnand %p1432_p8, %p1426_p5 }
  0x18   :  { %1436 = shalt.err (!%p1433_p9)
}
  0x19   :  { %64 = dma.hbm_to_vmem [thread:$0]  %s1807_s3, 16, %s62_s20, [#allocation9]  }
  0x1a   :  { %s1571_s30 = smov [#allocation11]   ;;  %s1572_s13 = smov [#allocation2]  }
  0x1b   :  { %s80_s12 = sshll.u32 %s1571_s30, 4  ;;  %s26_s14 = sshll.u32 %s1572_s13, 4  ;;  %s81_s12 = int_to_ptr.vmem [resolvable:$true] %s80_s12  ;;  %s27_s14 = int_to_ptr.vmem [resolvable:$true] %s26_s14 }
  0x1c   :  { %s1445_s15 = scalar_lea.vmem %s81_s12, 4096  ;;  %p1450_p11 = scmp.lt.s32.totalorder %s81_s12, %s81_s12 }
  0x1d   :  { %p1446_p10 = scmp.ne.s32.totalorder %s81_s12, %s1445_s15  ;;  %p1451_p12 = scmp.lt.s32.totalorder %s1445_s15, %s1445_s15 }
  0x1f   :  { %p1452_p13 = por %p1451_p12, %p1450_p11 }
  0x21   :  { %p1453_p0 = pnand %p1452_p13, %p1446_p10 }
  0x23   :  { %1456 = shalt.err (!%p1453_p0)
}
  0x24   :  { %86 = dma.hbm_to_vmem [thread:$0]  %s1809_s5, 4096, %s81_s12, [#allocation12], %s1569_s22, %s1569_s22, %s1570_s23  }
  0x25   :  { %s1465_s3 = scalar_lea.vmem %s27_s14, 128  ;;  %p1470_p2 = scmp.lt.s32.totalorder %s27_s14, %s27_s14 }
  0x26   :  { %p1466_p1 = scmp.ne.s32.totalorder %s27_s14, %s1465_s3  ;;  %p1471_p3 = scmp.lt.s32.totalorder %s1465_s3, %s1465_s3 }
  0x28   :  { %p1472_p4 = por %p1471_p3, %p1470_p2 }
  0x2a   :  { %p1473_p5 = pnand %p1472_p4, %p1466_p1 }
  0x2c   :  { %1476 = shalt.err (!%p1473_p5)
}
  0x2d   :  { %32 = dma.hbm_to_vmem [thread:$0]  %s1804_s0, 128, %s27_s14, [#allocation3], %s1569_s22, %s1569_s22, %s1570_s23  }
  0x2e   :  { %s1573_s19 = smov [#allocation7]   ;;  %s1574_s21 = smov [#allocation10]  }
  0x2f   :  { %s51_s20 = sshll.u32 %s1573_s19, 4  ;;  %s71_s24 = sshll.u32 %s1574_s21, 4  ;;  %s52_s20 = int_to_ptr.vmem [resolvable:$true] %s51_s20  ;;  %s72_s24 = int_to_ptr.vmem [resolvable:$true] %s71_s24 }
  0x30   :  { %s1485_s5 = scalar_lea.vmem %s52_s20, 16  ;;  %s1489_s25 = scalar_lea.vmem %s52_s20, 32 }
  0x31   :  { %p1486_p6 = scmp.ne.s32.totalorder %s52_s20, %s1485_s5  ;;  %p1490_p7 = scmp.lt.s32.totalorder %s52_s20, %s52_s20 }
  0x32   :  { %p1491_p8 = scmp.lt.s32.totalorder %s1489_s25, %s1485_s5 }
  0x34   :  { %p1492_p9 = por %p1491_p8, %p1490_p7 }
  0x36   :  { %p1493_p10 = pnand %p1492_p9, %p1486_p6 }
  0x38   :  { %1496 = shalt.err (!%p1493_p10)
}
  0x39   :  { %54 = dma.hbm_to_vmem [thread:$0]  %s1806_s2, 16, %s52_s20, [#allocation6]  }
  0x3a   :  { %s1505_s28 = scalar_lea.vmem %s72_s24, 16  ;;  %s1509_s0 = scalar_lea.vmem %s72_s24, 32 }
  0x3b   :  { %p1506_p11 = scmp.ne.s32.totalorder %s72_s24, %s1505_s28  ;;  %p1510_p12 = scmp.lt.s32.totalorder %s72_s24, %s72_s24 }
  0x3c   :  { %p1511_p13 = scmp.lt.s32.totalorder %s1509_s0, %s1505_s28 }
  0x3e   :  { %p1512_p0 = por %p1511_p13, %p1510_p12 }
  0x40   :  { %p1513_p1 = pnand %p1512_p0, %p1506_p11 }
  0x42   :  { %1516 = shalt.err (!%p1513_p1)
}
  0x43   :  { %74 = dma.hbm_to_vmem [thread:$0]  %s1808_s4, 16, %s72_s24, [#allocation9]  }
  0x44   :  { %s1575_s12 = smov [#allocation13]  }
  0x45   :  { %s98_s13 = sshll.u32 %s1575_s12, 4  ;;  %s99_s13 = int_to_ptr.vmem [resolvable:$true] %s98_s13 }
  0x46   :  { %s1525_s14 = scalar_lea.vmem %s99_s13, 1024  ;;  %p1530_p3 = scmp.lt.s32.totalorder %s99_s13, %s99_s13 }
  0x47   :  { %p1526_p2 = scmp.ne.s32.totalorder %s99_s13, %s1525_s14  ;;  %p1531_p4 = scmp.lt.s32.totalorder %s1525_s14, %s1525_s14 }
  0x49   :  { %p1532_p5 = por %p1531_p4, %p1530_p3 }
  0x4b   :  { %p1533_p6 = pnand %p1532_p5, %p1526_p2 }
  0x4d   :  { %1536 = shalt.err (!%p1533_p6)
}
  0x4e   :  { %104 = dma.hbm_to_vmem [thread:$0]  %s1813_s9, 1024, %s99_s13, [#allocation12], %s1569_s22, %s1569_s22, %s1570_s23  }
  0x4f   :  { %1557 = dma.done.wait [#allocation3], 128  }
  0x50   :  { %1558 = vsyncadd [#allocation3], 4294967168 }
  0x51   :  { %1559 = dma.done.wait [#allocation6], 1040  }
  0x52   :  { %1560 = vsyncadd [#allocation6], 4294966256 }
  0x53   :  { %1561 = dma.done.wait [#allocation9], 32  }
  0x54   :  { %1562 = vsyncadd [#allocation9], 4294967264 }
  0x55   :  { %1563 = dma.done.wait [#allocation12], 5120  }
  0x56   :  { %1564 = vsyncadd [#allocation12], 4294962176  ;;  %v1576_v0 = vmov 0.0   ;;  %vm1577_vm0 = vmmov 0   ;;  %v1324_v1 = vld [vmem:[#allocation5 + $0x38] sm:$0xff]   ;;  %v1325_v2 = vld [vmem:[#allocation5 + $0x30] sm:$0xff]  }
  0x57   :  { %1190 = vmatprep.subr.bf16.mxu0 %v1576_v0  ;;  %1206 = vmatprep.mubr.msk.bf16.mxu0 %vm1577_vm0, %v1576_v0  ;;  %v1326_v3 = vld [vmem:[#allocation5 + $0x28] sm:$0xff]   ;;  %v1327_v4 = vld [vmem:[#allocation5 + $0x20] sm:$0xff]   ;;  %v1328_v5 = vld [vmem:[#allocation5 + $0x18] sm:$0xff]  }
  0x58   :  { %1210 = vmatprep.subr.bf16.mxu1 %v1576_v0  ;;  %1226 = vmatprep.mubr.msk.bf16.mxu1 %vm1577_vm0, %v1576_v0  ;;  %v1329_v6 = vld [vmem:[#allocation5 + $0x10] sm:$0xff]   ;;  %v1330_v7 = vld [vmem:[#allocation5 + $0x8] sm:$0xff]   ;;  %v1331_v8 = vld [vmem:[#allocation5] sm:$0xff]  }
  0x59   :  { %1191 = vmatpush3.bf16.msra.mxu0 %v1324_v1  ;;  %v1332_v9 = vld [vmem:[#allocation2] sm:$0xff]   ;;  %v1071_v10 = vld [vmem:[#allocation7] ss:$0 sm:$0xff]  ;;  %v1335_v27 = vld [vmem:[#allocation11 + $0x28] sm:$0xff]  }
  0x5a   :  { %1192 = vmatprep.subr.bf16.mxu0 %v1576_v0  ;;  %v1333_v25 = vld [vmem:[#allocation11 + $0x38] sm:$0xff]   ;;  %v1334_v26 = vld [vmem:[#allocation11 + $0x30] sm:$0xff]   ;;  %v1336_v28 = vld [vmem:[#allocation11 + $0x20] sm:$0xff]  }
  0x5b   :  { %1211 = vmatpush3.bf16.msra.mxu1 %v1333_v25  ;;  %v1337_v29 = vld [vmem:[#allocation11 + $0x18] sm:$0xff]   ;;  %v1338_v30 = vld [vmem:[#allocation11 + $0x10] sm:$0xff]   ;;  %v1339_v31 = vld [vmem:[#allocation11 + $0x8] sm:$0xff]  }
  0x5c   :  { %1212 = vmatprep.subr.bf16.mxu1 %v1576_v0  ;;  %v1340_v32 = vld [vmem:[#allocation11] sm:$0xff]   ;;  %v1081_v48 = vld [vmem:[#allocation8] ss:$0 sm:$0xff]  ;;  %v1082_v52 = vld [vmem:[#allocation10] ss:$0 sm:$0xff] }
  0x5d   :  { %1193 = vmatpush3.bf16.msra.mxu0 %v1325_v2  ;;  %v1083_v60 = vld [vmem:[%s1810_s6] ss:$0 sm:$0xff] }
  0x5e   :  { %1194 = vmatprep.subr.bf16.mxu0 %v1576_v0 }
  0x5f   :  { %1213 = vmatpush3.bf16.msra.mxu1 %v1334_v26 }
  0x60   :  { %1214 = vmatprep.subr.bf16.mxu1 %v1576_v0 }
  0x61   :  { %1195 = vmatpush3.bf16.msra.mxu0 %v1326_v3 }
  0x62   :  { %1196 = vmatprep.subr.bf16.mxu0 %v1576_v0 }
  0x63   :  { %1215 = vmatpush3.bf16.msra.mxu1 %v1335_v27 }
  0x64   :  { %1216 = vmatprep.subr.bf16.mxu1 %v1576_v0 }
  0x65   :  { %1197 = vmatpush3.bf16.msra.mxu0 %v1327_v4 }
  0x66   :  { %1198 = vmatprep.subr.bf16.mxu0 %v1576_v0 }
  0x67   :  { %1217 = vmatpush3.bf16.msra.mxu1 %v1336_v28 }
  0x68   :  { %1218 = vmatprep.subr.bf16.mxu1 %v1576_v0 }
  0x69   :  { %1199 = vmatpush3.bf16.msra.mxu0 %v1328_v5 }
  0x6a   :  { %1200 = vmatprep.subr.bf16.mxu0 %v1576_v0 }
  0x6b   :  { %1219 = vmatpush3.bf16.msra.mxu1 %v1337_v29 }
  0x6c   :  { %1220 = vmatprep.subr.bf16.mxu1 %v1576_v0 }
  0x6d   :  { %1201 = vmatpush3.bf16.msra.mxu0 %v1329_v6 }
  0x6e   :  { %1202 = vmatprep.subr.bf16.mxu0 %v1576_v0 }
  0x6f   :  { %1221 = vmatpush3.bf16.msra.mxu1 %v1338_v30 }
  0x70   :  { %1222 = vmatprep.subr.bf16.mxu1 %v1576_v0 }
  0x71   :  { %1203 = vmatpush3.bf16.msra.mxu0 %v1330_v7 }
  0x72   :  { %1204 = vmatprep.subr.bf16.mxu0 %v1576_v0 }
  0x73   :  { %1223 = vmatpush3.bf16.msra.mxu1 %v1339_v31 }
  0x74   :  { %1224 = vmatprep.subr.bf16.mxu1 %v1576_v0 }
  0x75   :  { %1205 = vmatpush3.bf16.msra.mxu0 %v1331_v8 }
  0x76   :  { %1230 = vmatprep.subr.bf16.mxu0 %v1576_v0 }
  0x77   :  { %1225 = vmatpush3.bf16.msra.mxu1 %v1340_v32 }
  0x78   :  { %1207 = vmatmul.mubr.bf16.vlgmr.msra.gmra.mxu0 %v1332_v9  ;;  %1250 = vmatprep.subr.bf16.mxu1 %v1576_v0 }
  0x79   :  { %1246 = vmatprep.mubr.msk.bf16.mxu0 %vm1577_vm0, %v1576_v0 }
 0x138   :  { %v242_v11 = vpop.f32.mrf.mxu0 }
 0x139   :  { %v243_v12 = vadd.f32 %v1071_v10, %v242_v11 }
 0x13a   :  { %v1208_v13 = vpop.f32.mrf.mxu0 }
 0x13b   :  { %251 = vadd.xlane.f32.xlu0 %v243_v12  ;;  %v1342_v13 = vld [vmem:[#allocation11 + $0x70] sm:$0xff]  }
 0x13c   :  { %v245_v14 = vpop.f32.mrf.mxu0 }
 0x13d   :  { %v246_v15 = vadd.f32 %v1071_v10, %v245_v14  ;;  %v1343_v14 = vld [vmem:[#allocation11 + $0x68] sm:$0xff]  }
 0x13e   :  { %v1209_v16 = vpop.f32.mrf.mxu0 }
 0x13f   :  { %253 = vadd.xlane.f32.xlu0 %v246_v15  ;;  %v1345_v16 = vld [vmem:[#allocation11 + $0x58] sm:$0xff]  }
 0x1c4   :  { %v252_v17 = vpop.xlane.xlu0 %251 }
 0x1c5   :  { %v255_v18 = vmul.f32 0.03125, %v252_v17  ;;  %v1346_v17 = vld [vmem:[#allocation11 + $0x50] sm:$0xff]  }
 0x1c7   :  { %v257_v19 = vsub.f32 %v243_v12, %v255_v18  ;;  %v267_v33 = vmul.f32 %v255_v18, %v255_v18  ;;  %v1341_v12 = vld [vmem:[#allocation11 + $0x78] sm:$0xff]   ;;  %v1347_v18 = vld [vmem:[#allocation11 + $0x48] sm:$0xff]  }
 0x1c8   :  { %v254_v20 = vpop.xlane.xlu0 %253  ;;  %1231 = vmatpush3.bf16.msra.mxu0 %v1341_v12 }
 0x1c9   :  { %v256_v21 = vmul.f32 0.03125, %v254_v20  ;;  %v259_v22 = vmul.f32 %v257_v19, %v257_v19  ;;  %v269_v35 = vmul.f32 3.0, %v267_v33  ;;  %1232 = vmatprep.subr.bf16.mxu0 %v1576_v0 }
 0x1cb   :  { %v258_v23 = vsub.f32 %v246_v15, %v256_v21  ;;  %261 = vadd.xlane.f32.xlu1 %v259_v22  ;;  %v268_v36 = vmul.f32 %v256_v21, %v256_v21  ;;  %v1344_v15 = vld [vmem:[#allocation11 + $0x60] sm:$0xff]  }
 0x1cc   :  { %1233 = vmatpush3.bf16.msra.mxu0 %v1342_v13 }
 0x1cd   :  { %v260_v24 = vmul.f32 %v258_v23, %v258_v23  ;;  %v270_v40 = vmul.f32 3.0, %v268_v36  ;;  %1234 = vmatprep.subr.bf16.mxu0 %v1576_v0 }
 0x1cf   :  { %263 = vadd.xlane.f32.xlu1 %v260_v24 }
 0x1d0   :  { %1235 = vmatpush3.bf16.msra.mxu0 %v1343_v14 }
 0x1d1   :  { %1236 = vmatprep.subr.bf16.mxu0 %v1576_v0 }
 0x1d4   :  { %1237 = vmatpush3.bf16.msra.mxu0 %v1344_v15 }
 0x1d5   :  { %1238 = vmatprep.subr.bf16.mxu0 %v1576_v0 }
 0x1d8   :  { %1239 = vmatpush3.bf16.msra.mxu0 %v1345_v16 }
 0x1d9   :  { %1240 = vmatprep.subr.bf16.mxu0 %v1576_v0 }
 0x1dc   :  { %1241 = vmatpush3.bf16.msra.mxu0 %v1346_v17 }
 0x1dd   :  { %1242 = vmatprep.subr.bf16.mxu0 %v1576_v0 }
 0x1e0   :  { %1243 = vmatpush3.bf16.msra.mxu0 %v1347_v18 }
 0x1e1   :  { %1244 = vmatprep.subr.bf16.mxu0 %v1576_v0 }
 0x254   :  { %v262_v34 = vpop.xlane.xlu1 %261 }
 0x255   :  { %v265_v37 = vmul.f32 0.03125, %v262_v34 }
 0x257   :  { %v271_v38 = vsub.f32 %v265_v37, %v269_v35  ;;  %v1092_v35 = vld [vmem:[%s1811_s7] ss:$0 sm:$0xff] }
 0x258   :  { %v264_v39 = vpop.xlane.xlu1 %263 }
 0x259   :  { %v273_v41 = vmax.f32 %v271_v38, 0.0  ;;  %v266_v42 = vmul.f32 0.03125, %v264_v39  ;;  %v1093_v39 = vld [vmem:[%s1812_s8] ss:$0 sm:$0xff] }
 0x25b   :  { %v275_v43 = vadd.f32 1e-05, %v273_v41  ;;  %v272_v44 = vsub.f32 %v266_v42, %v270_v40 }
 0x25d   :  { %1373 = vrsqrt.f32 %v275_v43  ;;  %v274_v45 = vmax.f32 %v272_v44, 0.0 }
 0x25f   :  { %v276_v46 = vadd.f32 1e-05, %v274_v45 }
 0x261   :  { %1375 = vrsqrt.f32 %v276_v46 }
 0x26a   :  { %v1374_v47 = vpop.eup %1373 }
 0x26b   :  { %v279_v49 = vmul.f32 %v1374_v47, %v257_v19  ;;  %v1348_v19 = vld [vmem:[#allocation11 + $0x40] sm:$0xff]   ;;  %v1094_v47 = vld [vmem:[%s1810_s6 + $0x1] ss:$0 sm:$0xff] }
 0x26c   :  { %1245 = vmatpush3.bf16.msra.mxu0 %v1348_v19 }
 0x26d   :  { %v287_v50 = vmul.f32 %v1081_v48, %v279_v49  ;;  %1270 = vmatprep.subr.bf16.mxu0 %v1576_v0 }
 0x26e   :  { %v1376_v51 = vpop.eup %1375 }
 0x26f   :  { %v280_v53 = vmul.f32 %v1376_v51, %v258_v23  ;;  %v295_v55 = vadd.f32 %v1082_v52, %v287_v50 }
 0x271   :  { %v288_v54 = vmul.f32 %v1081_v48, %v280_v53  ;;  %v297_v57 = vmax.f32 %v295_v55, 0.0 }
 0x273   :  { %v296_v56 = vadd.f32 %v1082_v52, %v288_v54 }
 0x275   :  { %v298_v58 = vmax.f32 %v296_v56, 0.0 }
 0x277   :  { %v299_v59 = vpack.c.bf16 %v298_v58, %v297_v57 }
 0x279   :  { %1227 = vmatmul.mubr.bf16.vlgmr.msra.gmra.mxu1 %v299_v59 }
 0x27a   :  { %1266 = vmatprep.mubr.msk.bf16.mxu1 %vm1577_vm0, %v1576_v0 }
 0x339   :  { %v403_v61 = vpop.f32.mrf.mxu1 }
 0x33a   :  { %v404_v62 = vadd.f32 %v1083_v60, %v403_v61 }
 0x33b   :  { %v1228_v63 = vpop.f32.mrf.mxu1 }
 0x33c   :  { %412 = vadd.xlane.f32.xlu0 %v404_v62  ;;  %v1350_v63 = vld [vmem:[#allocation11 + $0xb0] sm:$0xff]  }
 0x33d   :  { %v406_v1 = vpop.f32.mrf.mxu1 }
 0x33e   :  { %v407_v2 = vadd.f32 %v1083_v60, %v406_v1  ;;  %v1351_v1 = vld [vmem:[#allocation11 + $0xa8] sm:$0xff]  }
 0x33f   :  { %v1229_v3 = vpop.f32.mrf.mxu1 }
 0x340   :  { %414 = vadd.xlane.f32.xlu1 %v407_v2  ;;  %v1353_v3 = vld [vmem:[#allocation11 + $0x98] sm:$0xff]  }
 0x3c5   :  { %v413_v4 = vpop.xlane.xlu0 %412 }
 0x3c6   :  { %v416_v5 = vmul.f32 0.03125, %v413_v4  ;;  %v1354_v4 = vld [vmem:[#allocation11 + $0x90] sm:$0xff]  }
 0x3c8   :  { %v418_v6 = vsub.f32 %v404_v62, %v416_v5  ;;  %v428_v20 = vmul.f32 %v416_v5, %v416_v5  ;;  %v1349_v62 = vld [vmem:[#allocation11 + $0xb8] sm:$0xff]   ;;  %v1355_v5 = vld [vmem:[#allocation11 + $0x88] sm:$0xff]  }
 0x3c9   :  { %v415_v7 = vpop.xlane.xlu1 %414  ;;  %1251 = vmatpush3.bf16.msra.mxu1 %v1349_v62 }
 0x3ca   :  { %v417_v8 = vmul.f32 0.03125, %v415_v7  ;;  %v420_v9 = vmul.f32 %v418_v6, %v418_v6  ;;  %v430_v22 = vmul.f32 3.0, %v428_v20  ;;  %1252 = vmatprep.subr.bf16.mxu1 %v1576_v0 }
 0x3cc   :  { %v419_v10 = vsub.f32 %v407_v2, %v417_v8  ;;  %422 = vadd.xlane.f32.xlu0 %v420_v9  ;;  %v429_v23 = vmul.f32 %v417_v8, %v417_v8  ;;  %v1352_v2 = vld [vmem:[#allocation11 + $0xa0] sm:$0xff]  }
 0x3cd   :  { %1253 = vmatpush3.bf16.msra.mxu1 %v1350_v63 }
 0x3ce   :  { %v421_v11 = vmul.f32 %v419_v10, %v419_v10  ;;  %v431_v27 = vmul.f32 3.0, %v429_v23  ;;  %1254 = vmatprep.subr.bf16.mxu1 %v1576_v0 }
 0x3d0   :  { %424 = vadd.xlane.f32.xlu1 %v421_v11 }
 0x3d1   :  { %1255 = vmatpush3.bf16.msra.mxu1 %v1351_v1 }
 0x3d2   :  { %1256 = vmatprep.subr.bf16.mxu1 %v1576_v0 }
 0x3d5   :  { %1257 = vmatpush3.bf16.msra.mxu1 %v1352_v2 }
 0x3d6   :  { %1258 = vmatprep.subr.bf16.mxu1 %v1576_v0 }
 0x3d9   :  { %1259 = vmatpush3.bf16.msra.mxu1 %v1353_v3 }
 0x3da   :  { %1260 = vmatprep.subr.bf16.mxu1 %v1576_v0 }
 0x3dd   :  { %1261 = vmatpush3.bf16.msra.mxu1 %v1354_v4 }
 0x3de   :  { %1262 = vmatprep.subr.bf16.mxu1 %v1576_v0 }
 0x3e1   :  { %1263 = vmatpush3.bf16.msra.mxu1 %v1355_v5 }
 0x3e2   :  { %1264 = vmatprep.subr.bf16.mxu1 %v1576_v0 }
 0x455   :  { %v423_v21 = vpop.xlane.xlu0 %422 }
 0x456   :  { %v426_v24 = vmul.f32 0.03125, %v423_v21 }
 0x458   :  { %v432_v25 = vsub.f32 %v426_v24, %v430_v22  ;;  %v1103_v22 = vld [vmem:[%s1811_s7 + $0x1] ss:$0 sm:$0xff] }
 0x459   :  { %v425_v26 = vpop.xlane.xlu1 %424  ;;  %v1104_v24 = vld [vmem:[%s1812_s8 + $0x1] ss:$0 sm:$0xff] }
 0x45a   :  { %v434_v28 = vmax.f32 %v432_v25, 0.0  ;;  %v427_v29 = vmul.f32 0.03125, %v425_v26 }
 0x45c   :  { %v436_v30 = vadd.f32 1e-05, %v434_v28  ;;  %v433_v31 = vsub.f32 %v427_v29, %v431_v27 }
 0x45e   :  { %1377 = vrsqrt.f32 %v436_v30  ;;  %v435_v32 = vmax.f32 %v433_v31, 0.0 }
 0x460   :  { %v437_v33 = vadd.f32 1e-05, %v435_v32 }
 0x462   :  { %1379 = vrsqrt.f32 %v437_v33 }
 0x46b   :  { %v1378_v34 = vpop.eup %1377 }
 0x46c   :  { %v440_v36 = vmul.f32 %v1378_v34, %v418_v6  ;;  %v1356_v6 = vld [vmem:[#allocation11 + $0x80] sm:$0xff]  }
 0x46d   :  { %1265 = vmatpush3.bf16.msra.mxu1 %v1356_v6 }
 0x46e   :  { %v446_v37 = vmul.f32 %v1092_v35, %v440_v36  ;;  %1290 = vmatprep.subr.bf16.mxu1 %v1576_v0  ;;  %v1105_v36 = vld [vmem:[%s1810_s6 + $0x2] ss:$0 sm:$0xff] }
 0x46f   :  { %v1380_v38 = vpop.eup %1379 }
 0x470   :  { %v441_v40 = vmul.f32 %v1380_v38, %v419_v10  ;;  %v1717_v42 = vadd.f32 %v1093_v39, %v446_v37 }
 0x472   :  { %v447_v41 = vmul.f32 %v1092_v35, %v441_v40  ;;  %v454_v44 = vmax.f32 %v1717_v42, 0.0 }
 0x474   :  { %v1719_v43 = vadd.f32 %v1093_v39, %v447_v41 }
 0x476   :  { %v455_v45 = vmax.f32 %v1719_v43, 0.0 }
 0x478   :  { %v456_v46 = vpack.c.bf16 %v455_v45, %v454_v44 }
 0x47a   :  { %1247 = vmatmul.mubr.bf16.vlgmr.msra.gmra.mxu0 %v456_v46 }
 0x47b   :  { %1286 = vmatprep.mubr.msk.bf16.mxu0 %vm1577_vm0, %v1576_v0 }
 0x53a   :  { %v561_v48 = vpop.f32.mrf.mxu0 }
 0x53b   :  { %v562_v49 = vadd.f32 %v1094_v47, %v561_v48 }
 0x53c   :  { %v1248_v50 = vpop.f32.mrf.mxu0 }
 0x53d   :  { %570 = vadd.xlane.f32.xlu0 %v562_v49 }
 0x53e   :  { %v564_v51 = vpop.f32.mrf.mxu0 }
 0x53f   :  { %v565_v52 = vadd.f32 %v1094_v47, %v564_v51  ;;  %v1357_v51 = vld [vmem:[#allocation11 + $0xf8] sm:$0xff]  }
 0x540   :  { %v1249_v53 = vpop.f32.mrf.mxu0  ;;  %1271 = vmatpush3.bf16.msra.mxu0 %v1357_v51 }
 0x541   :  { %572 = vadd.xlane.f32.xlu1 %v565_v52  ;;  %1272 = vmatprep.subr.bf16.mxu0 %v1576_v0  ;;  %v1359_v53 = vld [vmem:[#allocation11 + $0xe8] sm:$0xff]  }
 0x5c6   :  { %v571_v54 = vpop.xlane.xlu0 %570 }
 0x5c7   :  { %v574_v55 = vmul.f32 0.03125, %v571_v54  ;;  %v1360_v54 = vld [vmem:[#allocation11 + $0xe0] sm:$0xff]  }
 0x5c9   :  { %v576_v56 = vsub.f32 %v562_v49, %v574_v55  ;;  %v586_v7 = vmul.f32 %v574_v55, %v574_v55  ;;  %v1361_v55 = vld [vmem:[#allocation11 + $0xd8] sm:$0xff]  }
 0x5ca   :  { %v573_v57 = vpop.xlane.xlu1 %572 }
 0x5cb   :  { %v575_v58 = vmul.f32 0.03125, %v573_v57  ;;  %v578_v59 = vmul.f32 %v576_v56, %v576_v56  ;;  %v588_v9 = vmul.f32 3.0, %v586_v7  ;;  %v1363_v57 = vld [vmem:[#allocation11 + $0xc8] sm:$0xff]  }
 0x5cd   :  { %v577_v60 = vsub.f32 %v565_v52, %v575_v58  ;;  %580 = vadd.xlane.f32.xlu0 %v578_v59  ;;  %v587_v10 = vmul.f32 %v575_v58, %v575_v58  ;;  %v1358_v52 = vld [vmem:[#allocation11 + $0xf0] sm:$0xff]   ;;  %v1364_v58 = vld [vmem:[#allocation11 + $0xc0] sm:$0xff]  }
 0x5ce   :  { %1273 = vmatpush3.bf16.msra.mxu0 %v1358_v52 }
 0x5cf   :  { %v579_v61 = vmul.f32 %v577_v60, %v577_v60  ;;  %v589_v14 = vmul.f32 3.0, %v587_v10  ;;  %1274 = vmatprep.subr.bf16.mxu0 %v1576_v0 }
 0x5d1   :  { %582 = vadd.xlane.f32.xlu1 %v579_v61 }
 0x5d2   :  { %1275 = vmatpush3.bf16.msra.mxu0 %v1359_v53 }
 0x5d3   :  { %1276 = vmatprep.subr.bf16.mxu0 %v1576_v0 }
 0x5d6   :  { %1277 = vmatpush3.bf16.msra.mxu0 %v1360_v54 }
 0x5d7   :  { %1278 = vmatprep.subr.bf16.mxu0 %v1576_v0 }
 0x5da   :  { %1279 = vmatpush3.bf16.msra.mxu0 %v1361_v55 }
 0x5db   :  { %1280 = vmatprep.subr.bf16.mxu0 %v1576_v0 }
 0x656   :  { %v581_v8 = vpop.xlane.xlu0 %580 }
 0x657   :  { %v584_v11 = vmul.f32 0.03125, %v581_v8 }
 0x659   :  { %v590_v12 = vsub.f32 %v584_v11, %v588_v9  ;;  %v1114_v11 = vld [vmem:[%s1811_s7 + $0x2] ss:$0 sm:$0xff] }
 0x65a   :  { %v583_v13 = vpop.xlane.xlu1 %582 }
 0x65b   :  { %v592_v15 = vmax.f32 %v590_v12, 0.0  ;;  %v585_v16 = vmul.f32 0.03125, %v583_v13 }
 0x65d   :  { %v594_v17 = vadd.f32 1e-05, %v592_v15  ;;  %v591_v18 = vsub.f32 %v585_v16, %v589_v14  ;;  %v1115_v15 = vld [vmem:[%s1812_s8 + $0x2] ss:$0 sm:$0xff] }
 0x65f   :  { %1381 = vrsqrt.f32 %v594_v17  ;;  %v593_v19 = vmax.f32 %v591_v18, 0.0 }
 0x661   :  { %v595_v20 = vadd.f32 1e-05, %v593_v19 }
 0x663   :  { %1383 = vrsqrt.f32 %v595_v20 }
 0x66c   :  { %v1382_v21 = vpop.eup %1381 }
 0x66d   :  { %v598_v23 = vmul.f32 %v1382_v21, %v576_v56  ;;  %v1362_v56 = vld [vmem:[#allocation11 + $0xd0] sm:$0xff]  }
 0x66e   :  { %1281 = vmatpush3.bf16.msra.mxu0 %v1362_v56 }
 0x66f   :  { %v604_v25 = vmul.f32 %v1103_v22, %v598_v23  ;;  %1282 = vmatprep.subr.bf16.mxu0 %v1576_v0  ;;  %v1116_v23 = vld [vmem:[%s1810_s6 + $0x3] ss:$0 sm:$0xff] }
 0x670   :  { %v1384_v26 = vpop.eup %1383 }
 0x671   :  { %v599_v27 = vmul.f32 %v1384_v26, %v577_v60  ;;  %v610_v28 = vadd.f32 %v1104_v24, %v604_v25 }
 0x672   :  { %1283 = vmatpush3.bf16.msra.mxu0 %v1363_v57 }
 0x673   :  { %v605_v29 = vmul.f32 %v1103_v22, %v599_v27  ;;  %v612_v31 = vmax.f32 %v610_v28, 0.0  ;;  %1284 = vmatprep.subr.bf16.mxu0 %v1576_v0 }
 0x675   :  { %v611_v30 = vadd.f32 %v1104_v24, %v605_v29  ;;  %v614_v33 = vadd.f32 %v612_v31, %v454_v44 }
 0x676   :  { %1285 = vmatpush3.bf16.msra.mxu0 %v1364_v58 }
 0x677   :  { %v613_v32 = vmax.f32 %v611_v30, 0.0 }
 0x679   :  { %v615_v34 = vadd.f32 %v613_v32, %v455_v45 }
 0x67b   :  { %v616_v35 = vpack.c.bf16 %v615_v34, %v614_v33 }
 0x67d   :  { %1267 = vmatmul.mubr.bf16.vlgmr.msra.gmra.mxu1 %v616_v35 }
 0x67e   :  { %1306 = vmatprep.mubr.msk.bf16.mxu1 %vm1577_vm0, %v1576_v0 }
 0x73d   :  { %v721_v37 = vpop.f32.mrf.mxu1 }
 0x73e   :  { %v722_v38 = vadd.f32 %v1105_v36, %v721_v37 }
 0x73f   :  { %v1268_v39 = vpop.f32.mrf.mxu1 }
 0x740   :  { %730 = vadd.xlane.f32.xlu0 %v722_v38  ;;  %v1366_v39 = vld [vmem:[#allocation13 + $0x30] sm:$0xff]  }
 0x741   :  { %v724_v40 = vpop.f32.mrf.mxu1 }
 0x742   :  { %v725_v41 = vadd.f32 %v1105_v36, %v724_v40  ;;  %v1367_v40 = vld [vmem:[#allocation13 + $0x28] sm:$0xff]  }
 0x743   :  { %v1269_v42 = vpop.f32.mrf.mxu1 }
 0x744   :  { %732 = vadd.xlane.f32.xlu1 %v725_v41  ;;  %v1369_v42 = vld [vmem:[#allocation13 + $0x18] sm:$0xff]  }
 0x7c9   :  { %v731_v44 = vpop.xlane.xlu0 %730 }
 0x7ca   :  { %v734_v43 = vmul.f32 0.03125, %v731_v44  ;;  %v1370_v44 = vld [vmem:[#allocation13 + $0x10] sm:$0xff]  }
 0x7cc   :  { %v736_v45 = vsub.f32 %v722_v38, %v734_v43  ;;  %v746_v59 = vmul.f32 %v734_v43, %v734_v43  ;;  %v1365_v38 = vld [vmem:[#allocation13 + $0x38] sm:$0xff]   ;;  %v1371_v43 = vld [vmem:[#allocation13 + $0x8] sm:$0xff]  }
 0x7cd   :  { %v733_v46 = vpop.xlane.xlu1 %732  ;;  %1291 = vmatpush3.bf16.msra.mxu1 %v1365_v38 }
 0x7ce   :  { %v735_v47 = vmul.f32 0.03125, %v733_v46  ;;  %v738_v48 = vmul.f32 %v736_v45, %v736_v45  ;;  %v748_v61 = vmul.f32 3.0, %v746_v59  ;;  %1292 = vmatprep.subr.bf16.mxu1 %v1576_v0 }
 0x7d0   :  { %v737_v49 = vsub.f32 %v725_v41, %v735_v47  ;;  %740 = vadd.xlane.f32.xlu0 %v738_v48  ;;  %v747_v62 = vmul.f32 %v735_v47, %v735_v47  ;;  %v1368_v41 = vld [vmem:[#allocation13 + $0x20] sm:$0xff]  }
 0x7d1   :  { %1293 = vmatpush3.bf16.msra.mxu1 %v1366_v39 }
 0x7d2   :  { %v739_v50 = vmul.f32 %v737_v49, %v737_v49  ;;  %v749_v3 = vmul.f32 3.0, %v747_v62  ;;  %1294 = vmatprep.subr.bf16.mxu1 %v1576_v0  ;;  %v1126_v62 = vld [vmem:[%s1812_s8 + $0x3] ss:$0 sm:$0xff]  ;;  %s1578_s8 = smov [#allocation14]  }
 0x7d3   :  { %s1056_s2 = sshll.u32 %s1578_s8, 4  ;;  %s1057_s2 = int_to_ptr.vmem [resolvable:$true] %s1056_s2 }
 0x7d4   :  { %742 = vadd.xlane.f32.xlu1 %v739_v50  ;;  %s1537_s15 = scalar_lea.vmem %s1057_s2, 256  ;;  %p1542_p8 = scmp.lt.s32.totalorder %s1057_s2, %s1057_s2 }
 0x7d5   :  { %1295 = vmatpush3.bf16.msra.mxu1 %v1367_v40  ;;  %p1538_p7 = scmp.ne.s32.totalorder %s1057_s2, %s1537_s15  ;;  %p1543_p9 = scmp.lt.s32.totalorder %s1537_s15, %s1537_s15 }
 0x7d6   :  { %1296 = vmatprep.subr.bf16.mxu1 %v1576_v0 }
 0x7d7   :  { %p1544_p10 = por %p1543_p9, %p1542_p8 }
 0x7d9   :  { %1297 = vmatpush3.bf16.msra.mxu1 %v1368_v41  ;;  %p1545_p11 = pnand %p1544_p10, %p1538_p7 }
 0x7da   :  { %1298 = vmatprep.subr.bf16.mxu1 %v1576_v0 }
 0x7dd   :  { %1299 = vmatpush3.bf16.msra.mxu1 %v1369_v42 }
 0x7de   :  { %1300 = vmatprep.subr.bf16.mxu1 %v1576_v0 }
 0x7e1   :  { %1301 = vmatpush3.bf16.msra.mxu1 %v1370_v44 }
 0x7e2   :  { %1302 = vmatprep.subr.bf16.mxu1 %v1576_v0 }
 0x7e5   :  { %1303 = vmatpush3.bf16.msra.mxu1 %v1371_v43 }
 0x7e6   :  { %1304 = vmatprep.subr.bf16.mxu1 %v1576_v0  ;;  %v1125_v0 = vld [vmem:[%s1811_s7 + $0x3] ss:$0 sm:$0xff] }
 0x859   :  { %v741_v60 = vpop.xlane.xlu0 %740 }
 0x85a   :  { %v744_v63 = vmul.f32 0.03125, %v741_v60 }
 0x85c   :  { %v750_v1 = vsub.f32 %v744_v63, %v748_v61 }
 0x85d   :  { %v743_v2 = vpop.xlane.xlu1 %742 }
 0x85e   :  { %v752_v4 = vmax.f32 %v750_v1, 0.0  ;;  %v745_v5 = vmul.f32 0.03125, %v743_v2 }
 0x860   :  { %v754_v6 = vadd.f32 1e-05, %v752_v4  ;;  %v751_v7 = vsub.f32 %v745_v5, %v749_v3 }
 0x862   :  { %1385 = vrsqrt.f32 %v754_v6  ;;  %v753_v8 = vmax.f32 %v751_v7, 0.0 }
 0x864   :  { %v755_v9 = vadd.f32 1e-05, %v753_v8 }
 0x866   :  { %1387 = vrsqrt.f32 %v755_v9 }
 0x86f   :  { %v1386_v10 = vpop.eup %1385 }
 0x870   :  { %v758_v12 = vmul.f32 %v1386_v10, %v736_v45  ;;  %v1372_v45 = vld [vmem:[#allocation13] sm:$0xff]  }
 0x871   :  { %1305 = vmatpush3.bf16.msra.mxu1 %v1372_v45 }
 0x872   :  { %v764_v13 = vmul.f32 %v1114_v11, %v758_v12 }
 0x873   :  { %v1388_v14 = vpop.eup %1387 }
 0x874   :  { %v759_v16 = vmul.f32 %v1388_v14, %v737_v49  ;;  %v1768_v18 = vadd.f32 %v1115_v15, %v764_v13 }
 0x876   :  { %v765_v17 = vmul.f32 %v1114_v11, %v759_v16  ;;  %v772_v20 = vmax.f32 %v1768_v18, 0.0  ;;  %v1127_v11 = vld [vmem:[%s1814_s10] ss:$0 sm:$0xff] }
 0x878   :  { %v1770_v19 = vadd.f32 %v1115_v15, %v765_v17 }
 0x87a   :  { %v773_v21 = vmax.f32 %v1770_v19, 0.0 }
 0x87c   :  { %v774_v22 = vpack.c.bf16 %v773_v21, %v772_v20 }
 0x87e   :  { %1287 = vmatmul.mubr.bf16.vlgmr.msra.gmra.mxu0 %v774_v22 }
 0x93e   :  { %v879_v24 = vpop.f32.mrf.mxu0 }
 0x93f   :  { %v880_v25 = vadd.f32 %v1116_v23, %v879_v24 }
 0x940   :  { %v1288_v26 = vpop.f32.mrf.mxu0 }
 0x941   :  { %888 = vadd.xlane.f32.xlu0 %v880_v25 }
 0x942   :  { %v882_v27 = vpop.f32.mrf.mxu0 }
 0x943   :  { %v883_v28 = vadd.f32 %v1116_v23, %v882_v27 }
 0x944   :  { %v1289_v29 = vpop.f32.mrf.mxu0 }
 0x945   :  { %890 = vadd.xlane.f32.xlu1 %v883_v28 }
 0x9ca   :  { %v889_v30 = vpop.xlane.xlu0 %888 }
 0x9cb   :  { %v892_v31 = vmul.f32 0.03125, %v889_v30 }
 0x9cd   :  { %v894_v32 = vsub.f32 %v880_v25, %v892_v31  ;;  %v904_v46 = vmul.f32 %v892_v31, %v892_v31 }
 0x9ce   :  { %v891_v33 = vpop.xlane.xlu1 %890 }
 0x9cf   :  { %v893_v34 = vmul.f32 0.03125, %v891_v33  ;;  %v896_v35 = vmul.f32 %v894_v32, %v894_v32  ;;  %v906_v48 = vmul.f32 3.0, %v904_v46 }
 0x9d1   :  { %v895_v36 = vsub.f32 %v883_v28, %v893_v34  ;;  %898 = vadd.xlane.f32.xlu0 %v896_v35  ;;  %v905_v49 = vmul.f32 %v893_v34, %v893_v34 }
 0x9d3   :  { %v897_v37 = vmul.f32 %v895_v36, %v895_v36  ;;  %v907_v53 = vmul.f32 3.0, %v905_v49 }
 0x9d5   :  { %900 = vadd.xlane.f32.xlu1 %v897_v37 }
 0xa5a   :  { %v899_v47 = vpop.xlane.xlu0 %898 }
 0xa5b   :  { %v902_v50 = vmul.f32 0.03125, %v899_v47 }
 0xa5d   :  { %v908_v51 = vsub.f32 %v902_v50, %v906_v48 }
 0xa5e   :  { %v901_v52 = vpop.xlane.xlu1 %900 }
 0xa5f   :  { %v910_v54 = vmax.f32 %v908_v51, 0.0  ;;  %v903_v55 = vmul.f32 0.03125, %v901_v52 }
 0xa61   :  { %v912_v56 = vadd.f32 1e-05, %v910_v54  ;;  %v909_v57 = vsub.f32 %v903_v55, %v907_v53 }
 0xa63   :  { %1389 = vrsqrt.f32 %v912_v56  ;;  %v911_v58 = vmax.f32 %v909_v57, 0.0 }
 0xa65   :  { %v913_v59 = vadd.f32 1e-05, %v911_v58 }
 0xa67   :  { %1391 = vrsqrt.f32 %v913_v59 }
 0xa70   :  { %v1390_v60 = vpop.eup %1389 }
 0xa71   :  { %v916_v61 = vmul.f32 %v1390_v60, %v894_v32 }
 0xa73   :  { %v922_v63 = vmul.f32 %v1125_v0, %v916_v61 }
 0xa74   :  { %v1392_v1 = vpop.eup %1391 }
 0xa75   :  { %v917_v2 = vmul.f32 %v1392_v1, %v895_v36  ;;  %v928_v3 = vadd.f32 %v1126_v62, %v922_v63 }
 0xa77   :  { %v923_v4 = vmul.f32 %v1125_v0, %v917_v2  ;;  %v930_v6 = vmax.f32 %v928_v3, 0.0 }
 0xa79   :  { %v929_v5 = vadd.f32 %v1126_v62, %v923_v4  ;;  %v932_v8 = vadd.f32 %v930_v6, %v772_v20 }
 0xa7b   :  { %v931_v7 = vmax.f32 %v929_v5, 0.0 }
 0xa7d   :  { %v933_v9 = vadd.f32 %v931_v7, %v773_v21 }
 0xa7f   :  { %v934_v10 = vpack.c.bf16 %v933_v9, %v932_v8 }
 0xa81   :  { %1307 = vmatmul.mubr.bf16.vlgmr.msra.gmra.mxu1 %v934_v10 }
 0xb41   :  { %v1040_v12 = vpop.f32.mrf.mxu1 }
 0xb42   :  { %v1041_v13 = vadd.f32 %v1127_v11, %v1040_v12 }
 0xb43   :  { %v1308_v14 = vpop.f32.mrf.mxu1 }
 0xb44   :  { %1393 = vtanh.f32 %v1041_v13 }
 0xb45   :  { %v1043_v15 = vpop.f32.mrf.mxu1 }
 0xb46   :  { %v1044_v16 = vadd.f32 %v1127_v11, %v1043_v15 }
 0xb47   :  { %v1309_v17 = vpop.f32.mrf.mxu1 }
 0xb48   :  { %1395 = vtanh.f32 %v1044_v16 }
 0xb51   :  { %v1394_v18 = vpop.eup %1393 }
 0xb52   :  { %1049 = vst [vmem:[#allocation14] sm:$0xff] %v1394_v18 }
 0xb55   :  { %v1396_v19 = vpop.eup %1395 }
 0xb56   :  { %1050 = vst [vmem:[#allocation14 + $0x8] sm:$0xff] %v1396_v19 }
 0xb57   :  { %1548 = shalt.err (!%p1545_p11)
}
 0xb58   :  { %s1579_s10 = smov 128   ;;  %s1580_s4 = smov 8  }
 0xb59   :  { %1062 = dma.vmem_to_hbm [thread:$0]  %s1057_s2, 256, %s1815_s11, [#allocation4], %s1579_s10, %s1579_s10, %s1580_s4  }
 0xb5a   :  { %1565 = dma.done.wait [#allocation4], 256  }
 0xb5b   :  { %1566 = vsyncadd [#allocation4], 4294967040 }
 0xb5c   :  { %1066 = vsyncpa [#allocation3], 1 }
 0xb5d   :  { %1067 = vsyncpa [#allocation6], 1 }
 0xb5e   :  { %1068 = vsyncpa [#allocation9], 1 }
 0xb5f   :  { %1069 = vsyncpa [#allocation12], 1 }
 0xb60   :  { %1070 = vsyncpa [#allocation4], 1 }

</bundles_post_ra>
